<compile_context>
chip_gen: v5e
topology: v5e:2x2
jax: 0.10.0
libtpu: 0.0.40
codegen_flags: <defaults>
</compile_context>

<pallas_src>
import functools

import jax
import jax.numpy as jnp
from jax.experimental import pallas as pl
from jax.experimental.pallas import tpu as pltpu

KH = KW = 3            # conv kernel size
POOL_H = POOL_W = 7    # spatial size after conv1 (14x14) + 2x2 max-pool
VALID_ROWS = 49        # 7*7 valid pooled positions per image
IMG_ROWS = 56          # 49 padded to a multiple of 8
POOL_PAD_ROWS = 72     # 56 + 16 headroom for the shifted conv2 window reads
N_TAPS = KH * KW       # 9


# ----------------------------------------------------------------------------
# Fused kernel (one grid step == one image)
# ----------------------------------------------------------------------------
def _fused_convnet_kernel(xc_ref, w1_ref, sc1_ref, sh1_ref,
                          w2_ref, sc2_ref, sh2_ref,
                          gap_ref, wfc_ref, bfc_ref,
                          o_ref, pool_ref, taps_ref, *, apply_softmax):
    c1 = w1_ref.shape[-1]                      # n_hid

    # ---- Conv1 + folded BN1 + MaxPool 2x2: four per-pool-chunk matmuls with a
    #      running max; ReLU once at the end (max-then-ReLU == ReLU-then-max).
    pooled = None
    for c in range(4):
        xc_c = xc_ref[0, pl.ds(c * IMG_ROWS, IMG_ROWS), :]            # (56, 27) bf16
        h = jnp.dot(xc_c, w1_ref[...], preferred_element_type=jnp.float32)
        h = h * sc1_ref[...] + sh1_ref[...]
        pooled = h if pooled is None else jnp.maximum(pooled, h)
    pooled = jnp.maximum(pooled, 0.0)                                 # (56, c1) f32

    # ---- Stage pooled activations; zero ONLY the 16-row over-read tail.
    #      FRAGILE INVARIANT: pooled rows 49..55 hold garbage (= relu(shift1)
    #      from the zero-padded im2col rows).  They are only ever read by conv2
    #      output rows that the GAP mask zeroes (valid output rows read pooled
    #      rows <= 48), and rows 56..71 are zeroed here so every shifted window
    #      read stays finite.  Changing POOL_PAD_ROWS, the (hb, wb, ph, pw)
    #      im2col row order, or the GAP mask breaks this silently.
    pool_ref[pl.ds(0, IMG_ROWS), :] = pooled
    pool_ref[pl.ds(IMG_ROWS, POOL_PAD_ROWS - IMG_ROWS), :] = jnp.zeros(
        (POOL_PAD_ROWS - IMG_ROWS, c1), jnp.float32)

    # ---- Conv2 as ONE K = 9*c1 matmul: stage the nine shifted windows
    #      side-by-side (bf16 cast fused into the copy); w2 is pre-concatenated
    #      to (9*c1, c1) in the wrapper with the matching K order (tap, cin).
    for t in range(N_TAPS):
        kh, kw = divmod(t, KW)
        off = kh * POOL_W + kw
        taps_ref[:, pl.ds(t * c1, c1)] = (
            pool_ref[pl.ds(off, IMG_ROWS), :].astype(jnp.bfloat16))

    y = jnp.dot(taps_ref[...], w2_ref[...], preferred_element_type=jnp.float32)
    y = jnp.maximum(y * sc2_ref[...] + sh2_ref[...], 0.0)             # (56, c1) f32

    # ---- AdaptiveAvgPool(1,1): masked row-sum over the 25 valid 5x5 positions
    #      (gap_ref already carries the 1/25 scaling, zeros elsewhere).
    g = jnp.sum(y * gap_ref[...], axis=0, keepdims=True)              # (1, c1)

    # ---- FC (+ softmax).
    logits = jnp.dot(g, wfc_ref[...], preferred_element_type=jnp.float32) + bfc_ref[...]

    if apply_softmax:
        m = jnp.max(logits, axis=1, keepdims=True)
        e = jnp.exp(logits - m)
        s = jnp.sum(e, axis=1, keepdims=True)
        r = pl.reciprocal(s, approx=True)
        r = r * (2.0 - s * r)              # one Newton step -> ~f32 accuracy
        o_ref[0] = e * r
    else:
        o_ref[0] = logits


def _const_spec(shape):
    # Constant block index -> block stays resident in VMEM across grid steps.
    return pl.BlockSpec(shape, lambda i: (0,) * len(shape))


def fused_convnet(xc, w1f, sc1, sh1, w2cat, sc2, sh2, gmask, wfc, bfc, *, value):
    n_batch, _, k1 = xc.shape
    c1 = w1f.shape[1]
    n_cls = wfc.shape[1]
    kernel = functools.partial(_fused_convnet_kernel, apply_softmax=not value)
    inputs = (xc, w1f, sc1, sh1, w2cat, sc2, sh2, gmask, wfc, bfc)

    flops_per_img = (2 * 4 * IMG_ROWS * k1 * c1            # conv1 (4 chunks)
                     + 2 * IMG_ROWS * (N_TAPS * c1) * c1   # conv2 (K=576)
                     + 2 * c1 * n_cls)                     # FC
    cost = pl.CostEstimate(
        flops=int(n_batch * flops_per_img),
        transcendentals=int(n_batch * (n_cls + 1)),
        bytes_accessed=int(sum(a.size * a.dtype.itemsize for a in inputs)
                           + n_batch * n_cls * 4))

    out = pl.pallas_call(
        kernel,
        out_shape=jax.ShapeDtypeStruct((n_batch, 1, n_cls), jnp.float32),
        grid=(n_batch,),
        in_specs=[
            pl.BlockSpec((1, 4 * IMG_ROWS, k1), lambda i: (i, 0, 0)),  # per-image slab
            _const_spec(w1f.shape),
            _const_spec(sc1.shape),
            _const_spec(sh1.shape),
            _const_spec(w2cat.shape),
            _const_spec(sc2.shape),
            _const_spec(sh2.shape),
            _const_spec(gmask.shape),
            _const_spec(wfc.shape),
            _const_spec(bfc.shape),
        ],
        out_specs=pl.BlockSpec((1, 1, n_cls), lambda i: (i, 0, 0)),
        scratch_shapes=[
            pltpu.VMEM((POOL_PAD_ROWS, c1), jnp.float32),       # pooled activations
            pltpu.VMEM((IMG_ROWS, N_TAPS * c1), jnp.bfloat16),  # conv2 tap buffer
        ],
        compiler_params=pltpu.CompilerParams(
            dimension_semantics=("parallel",)),                 # v7x: split batch on 2 TCs
        cost_estimate=cost,
    )(*inputs)
    return out.reshape(n_batch, n_cls)


# ----------------------------------------------------------------------------
# Wrapper-side layout helpers (pure XLA, fused under jit)
# ----------------------------------------------------------------------------
def _im2col_pool_major(x):
    """x: (N, H, W, Cin) -> (N, 4*56, 9*Cin) im2col matrix for conv1.

    Per-image row order is (hb, wb, ph, pw): the four members of every 2x2
    max-pool window live in four equal 56-row chunks, so MaxPool becomes a
    running max over the four chunked conv1 matmuls.  The 49 valid rows per
    chunk are zero-padded to 56.
    """
    n, hi, wi, cin = x.shape
    ho, wo = hi - KH + 1, wi - KW + 1                       # 14, 14
    k = KH * KW * cin
    taps = [x[:, kh:kh + ho, kw:kw + wo, :] for kh in range(KH) for kw in range(KW)]
    t = jnp.stack(taps, axis=-2)                            # (N, 14, 14, 9, Cin)
    t = t.reshape(n, ho, wo, k)                             # K ordered (kh, kw, ci)
    t = t.reshape(n, ho // 2, 2, wo // 2, 2, k)             # (N, ph, hb, pw, wb, K)
    t = jnp.transpose(t, (0, 2, 4, 1, 3, 5))                # (N, hb, wb, ph, pw, K)
    t = t.reshape(n, 4, (ho // 2) * (wo // 2), k)           # (N, 4, 49, K)
    t = jnp.pad(t, ((0, 0), (0, 0), (0, IMG_ROWS - t.shape[2]), (0, 0)))
    return t.reshape(n, 4 * IMG_ROWS, k)


def _gap_mask():
    """(56, 1) mask: 1/25 on the 25 valid conv2 output rows, 0 elsewhere."""
    o2 = POOL_H - KH + 1                                    # 5
    r = jnp.arange(IMG_ROWS)
    valid = ((r // POOL_W < o2) & (r % POOL_W < o2)).astype(jnp.float32)
    return (valid / float(o2 * o2)).reshape(IMG_ROWS, 1)


# ----------------------------------------------------------------------------
# Parameters (BN folded into per-channel scale/shift, inference mode)
# ----------------------------------------------------------------------------
def init_params(key, num_classes=6, n_frames=1, n_hid=64):
    cin = 3 * n_frames
    eps = 1e-5
    ks = jax.random.split(key, 14)

    def fold_bn(bias, gamma, beta, rmean, rvar):
        scale = gamma / jnp.sqrt(rvar + eps)
        shift = beta + (bias - rmean) * scale
        return scale.reshape(1, -1), shift.reshape(1, -1)

    w1 = jax.random.normal(ks[0], (3, 3, cin, n_hid), jnp.float32) * (2.0 / (9 * cin)) ** 0.5
    b1 = 0.1 * jax.random.normal(ks[1], (n_hid,), jnp.float32)
    scale1, shift1 = fold_bn(
        b1,
        1.0 + 0.1 * jax.random.normal(ks[2], (n_hid,), jnp.float32),
        0.1 * jax.random.normal(ks[3], (n_hid,), jnp.float32),
        0.1 * jax.random.normal(ks[4], (n_hid,), jnp.float32),
        1.0 + 0.1 * jax.random.uniform(ks[5], (n_hid,), jnp.float32),
    )

    w2 = jax.random.normal(ks[6], (3, 3, n_hid, n_hid), jnp.float32) * (2.0 / (9 * n_hid)) ** 0.5
    b2 = 0.1 * jax.random.normal(ks[7], (n_hid,), jnp.float32)
    scale2, shift2 = fold_bn(
        b2,
        1.0 + 0.1 * jax.random.normal(ks[8], (n_hid,), jnp.float32),
        0.1 * jax.random.normal(ks[9], (n_hid,), jnp.float32),
        0.1 * jax.random.normal(ks[10], (n_hid,), jnp.float32),
        1.0 + 0.1 * jax.random.uniform(ks[11], (n_hid,), jnp.float32),
    )

    wfc = jax.random.normal(ks[12], (n_hid, num_classes), jnp.float32) * (1.0 / n_hid) ** 0.5
    bfc = 0.1 * jax.random.normal(ks[13], (1, num_classes), jnp.float32)

    return dict(w1=w1, scale1=scale1, shift1=shift1,
                w2=w2, scale2=scale2, shift2=shift2,
                wfc=wfc, bfc=bfc)


# ----------------------------------------------------------------------------
# Forward pass (single Pallas launch, gridded over batch)
# ----------------------------------------------------------------------------
@functools.partial(jax.jit, static_argnames=("value",))
def convnet_forward(x_nchw, params, value=False):
    x = jnp.transpose(x_nchw, (0, 2, 3, 1)).astype(jnp.float32)      # NCHW -> NHWC
    xc = _im2col_pool_major(x).astype(jnp.bfloat16)
    w1f = params["w1"].reshape(-1, params["w1"].shape[-1]).astype(jnp.bfloat16)
    n_hid = params["w2"].shape[3]
    w2cat = params["w2"].reshape(KH * KW * params["w2"].shape[2], n_hid).astype(jnp.bfloat16)
    gmask = _gap_mask()
    return fused_convnet(xc, w1f, params["scale1"], params["shift1"],
                         w2cat, params["scale2"], params["shift2"],
                         gmask, params["wfc"], params["bfc"], value=value)


# Pure-JAX reference (for correctness checking only).
def _reference_forward(x_nchw, params, value=False):
    x = jnp.transpose(x_nchw, (0, 2, 3, 1)).astype(jnp.float32)
    dn = ("NHWC", "HWIO", "NHWC")
    y = jax.lax.conv_general_dilated(x, params["w1"], (1, 1), "VALID",
                                     dimension_numbers=dn)
    y = jnp.maximum(y * params["scale1"].reshape(1, 1, 1, -1)
                    + params["shift1"].reshape(1, 1, 1, -1), 0.0)
    y = jax.lax.reduce_window(y, -jnp.inf, jax.lax.max,
                              (1, 2, 2, 1), (1, 2, 2, 1), "VALID")
    y = jax.lax.conv_general_dilated(y, params["w2"], (1, 1), "VALID",
                                     dimension_numbers=dn)
    y = jnp.maximum(y * params["scale2"].reshape(1, 1, 1, -1)
                    + params["shift2"].reshape(1, 1, 1, -1), 0.0)
    y = jnp.mean(y, axis=(1, 2))
    logits = y @ params["wfc"] + params["bfc"]
    return logits if value else jax.nn.softmax(logits, axis=1)


if __name__ == "__main__":
    key = jax.random.PRNGKey(0)
    pkey, xkey = jax.random.split(key)
    params = init_params(pkey, num_classes=6, n_frames=1, n_hid=64)

    # Small input consistent with the module: batch=2, channels=3*n_frames, 16x16.
    x = jax.random.normal(xkey, (2, 3, 16, 16), jnp.float32)

    out = jax.block_until_ready(convnet_forward(x, params, value=False))
    ref = jax.block_until_ready(_reference_forward(x, params, value=False))

    assert out.shape == (2, 6), out.shape
    row_sums = jnp.sum(out, axis=1)
    assert bool(jnp.all(jnp.abs(row_sums - 1.0) < 1e-3)), row_sums
    assert bool(jnp.all(jnp.abs(out - ref) < 2e-2)), (out, ref)

    logits = jax.block_until_ready(convnet_forward(x, params, value=True))
    ref_logits = _reference_forward(x, params, value=True)
    assert bool(jnp.all(jnp.abs(logits - ref_logits) < 5e-2)), (logits, ref_logits)

    print("KERNEL_OK")
</pallas_src>

<mosaic_0001>
module attributes {stable_mosaic.version = 11 : i64} {
  func.func @_fused_convnet_kernel(%arg0: i32, %arg1: memref<1x224x27xbf16, #tpu.memory_space<vmem>>, %arg2: memref<27x64xbf16, #tpu.memory_space<vmem>>, %arg3: memref<1x64xf32, #tpu.memory_space<vmem>>, %arg4: memref<1x64xf32, #tpu.memory_space<vmem>>, %arg5: memref<576x64xbf16, #tpu.memory_space<vmem>>, %arg6: memref<1x64xf32, #tpu.memory_space<vmem>>, %arg7: memref<1x64xf32, #tpu.memory_space<vmem>>, %arg8: memref<56x1xf32, #tpu.memory_space<vmem>>, %arg9: memref<64x6xf32, #tpu.memory_space<vmem>>, %arg10: memref<1x6xf32, #tpu.memory_space<vmem>>, %arg11: memref<1x1x6xf32, #tpu.memory_space<vmem>>, %arg12: memref<72x64xf32, #tpu.memory_space<vmem>>, %arg13: memref<56x576xbf16, #tpu.memory_space<vmem>>) attributes {dimension_semantics = [#tpu.dimension_semantics<parallel>], iteration_bounds = array<i64: 2>, scalar_prefetch = 0 : i64, scratch_operands = 2 : i64, tpu.core_type = #tpu.core_type<tc>, window_params = [{transform_indices = @transform_0, window_bounds = array<i64: 1, 224, 27>}, {pipeline_mode = #tpu.pipeline_mode<synchronous>, transform_indices = @transform_1, window_bounds = array<i64: 27, 64>}, {pipeline_mode = #tpu.pipeline_mode<synchronous>, transform_indices = @transform_2, window_bounds = array<i64: 1, 64>}, {pipeline_mode = #tpu.pipeline_mode<synchronous>, transform_indices = @transform_3, window_bounds = array<i64: 1, 64>}, {pipeline_mode = #tpu.pipeline_mode<synchronous>, transform_indices = @transform_4, window_bounds = array<i64: 576, 64>}, {pipeline_mode = #tpu.pipeline_mode<synchronous>, transform_indices = @transform_5, window_bounds = array<i64: 1, 64>}, {pipeline_mode = #tpu.pipeline_mode<synchronous>, transform_indices = @transform_6, window_bounds = array<i64: 1, 64>}, {pipeline_mode = #tpu.pipeline_mode<synchronous>, transform_indices = @transform_7, window_bounds = array<i64: 56, 1>}, {pipeline_mode = #tpu.pipeline_mode<synchronous>, transform_indices = @transform_8, window_bounds = array<i64: 64, 6>}, {pipeline_mode = #tpu.pipeline_mode<synchronous>, transform_indices = @transform_9, window_bounds = array<i64: 1, 6>}, {transform_indices = @transform_10, window_bounds = array<i64: 1, 1, 6>}]} {
    %c0 = arith.constant 0 : index
    %c0_0 = arith.constant 0 : index
    %c0_1 = arith.constant 0 : index
    %0 = vector.load %arg1[%c0, %c0_0, %c0_1] : memref<1x224x27xbf16, #tpu.memory_space<vmem>>, vector<1x56x27xbf16>
    %1 = vector.shape_cast %0 : vector<1x56x27xbf16> to vector<56x27xbf16>
    %c0_2 = arith.constant 0 : index
    %c0_3 = arith.constant 0 : index
    %2 = vector.load %arg2[%c0_2, %c0_3] : memref<27x64xbf16, #tpu.memory_space<vmem>>, vector<27x64xbf16>
    %cst = arith.constant dense<0.000000e+00> : vector<56x64xf32>
    %3 = tpu.matmul %1, %2, %cst {dimension_numbers = #tpu.dot_dimension_numbers<[1], [0], [0], [1], [0, 0, 1, 1], [], []>} : vector<56x27xbf16>, vector<27x64xbf16>, vector<56x64xf32> -> vector<56x64xf32>
    %c0_4 = arith.constant 0 : index
    %c0_5 = arith.constant 0 : index
    %4 = vector.load %arg3[%c0_4, %c0_5] : memref<1x64xf32, #tpu.memory_space<vmem>>, vector<1x64xf32>
    %5 = vector.broadcast %4 : vector<1x64xf32> to vector<56x64xf32>
    %6 = arith.mulf %3, %5 : vector<56x64xf32>
    %c0_6 = arith.constant 0 : index
    %c0_7 = arith.constant 0 : index
    %7 = vector.load %arg4[%c0_6, %c0_7] : memref<1x64xf32, #tpu.memory_space<vmem>>, vector<1x64xf32>
    %8 = vector.broadcast %7 : vector<1x64xf32> to vector<56x64xf32>
    %9 = arith.addf %6, %8 : vector<56x64xf32>
    %c0_8 = arith.constant 0 : index
    %c56 = arith.constant 56 : index
    %c0_9 = arith.constant 0 : index
    %10 = vector.load %arg1[%c0_8, %c56, %c0_9] : memref<1x224x27xbf16, #tpu.memory_space<vmem>>, vector<1x56x27xbf16>
    %11 = vector.shape_cast %10 : vector<1x56x27xbf16> to vector<56x27xbf16>
    %c0_10 = arith.constant 0 : index
    %c0_11 = arith.constant 0 : index
    %12 = vector.load %arg2[%c0_10, %c0_11] : memref<27x64xbf16, #tpu.memory_space<vmem>>, vector<27x64xbf16>
    %cst_12 = arith.constant dense<0.000000e+00> : vector<56x64xf32>
    %13 = tpu.matmul %11, %12, %cst_12 {dimension_numbers = #tpu.dot_dimension_numbers<[1], [0], [0], [1], [0, 0, 1, 1], [], []>} : vector<56x27xbf16>, vector<27x64xbf16>, vector<56x64xf32> -> vector<56x64xf32>
    %c0_13 = arith.constant 0 : index
    %c0_14 = arith.constant 0 : index
    %14 = vector.load %arg3[%c0_13, %c0_14] : memref<1x64xf32, #tpu.memory_space<vmem>>, vector<1x64xf32>
    %15 = vector.broadcast %14 : vector<1x64xf32> to vector<56x64xf32>
    %16 = arith.mulf %13, %15 : vector<56x64xf32>
    %c0_15 = arith.constant 0 : index
    %c0_16 = arith.constant 0 : index
    %17 = vector.load %arg4[%c0_15, %c0_16] : memref<1x64xf32, #tpu.memory_space<vmem>>, vector<1x64xf32>
    %18 = vector.broadcast %17 : vector<1x64xf32> to vector<56x64xf32>
    %19 = arith.addf %16, %18 : vector<56x64xf32>
    %20 = arith.maximumf %9, %19 : vector<56x64xf32>
    %c0_17 = arith.constant 0 : index
    %c112 = arith.constant 112 : index
    %c0_18 = arith.constant 0 : index
    %21 = vector.load %arg1[%c0_17, %c112, %c0_18] : memref<1x224x27xbf16, #tpu.memory_space<vmem>>, vector<1x56x27xbf16>
    %22 = vector.shape_cast %21 : vector<1x56x27xbf16> to vector<56x27xbf16>
    %c0_19 = arith.constant 0 : index
    %c0_20 = arith.constant 0 : index
    %23 = vector.load %arg2[%c0_19, %c0_20] : memref<27x64xbf16, #tpu.memory_space<vmem>>, vector<27x64xbf16>
    %cst_21 = arith.constant dense<0.000000e+00> : vector<56x64xf32>
    %24 = tpu.matmul %22, %23, %cst_21 {dimension_numbers = #tpu.dot_dimension_numbers<[1], [0], [0], [1], [0, 0, 1, 1], [], []>} : vector<56x27xbf16>, vector<27x64xbf16>, vector<56x64xf32> -> vector<56x64xf32>
    %c0_22 = arith.constant 0 : index
    %c0_23 = arith.constant 0 : index
    %25 = vector.load %arg3[%c0_22, %c0_23] : memref<1x64xf32, #tpu.memory_space<vmem>>, vector<1x64xf32>
    %26 = vector.broadcast %25 : vector<1x64xf32> to vector<56x64xf32>
    %27 = arith.mulf %24, %26 : vector<56x64xf32>
    %c0_24 = arith.constant 0 : index
    %c0_25 = arith.constant 0 : index
    %28 = vector.load %arg4[%c0_24, %c0_25] : memref<1x64xf32, #tpu.memory_space<vmem>>, vector<1x64xf32>
    %29 = vector.broadcast %28 : vector<1x64xf32> to vector<56x64xf32>
    %30 = arith.addf %27, %29 : vector<56x64xf32>
    %31 = arith.maximumf %20, %30 : vector<56x64xf32>
    %c0_26 = arith.constant 0 : index
    %c168 = arith.constant 168 : index
    %c0_27 = arith.constant 0 : index
    %32 = vector.load %arg1[%c0_26, %c168, %c0_27] : memref<1x224x27xbf16, #tpu.memory_space<vmem>>, vector<1x56x27xbf16>
    %33 = vector.shape_cast %32 : vector<1x56x27xbf16> to vector<56x27xbf16>
    %c0_28 = arith.constant 0 : index
    %c0_29 = arith.constant 0 : index
    %34 = vector.load %arg2[%c0_28, %c0_29] : memref<27x64xbf16, #tpu.memory_space<vmem>>, vector<27x64xbf16>
    %cst_30 = arith.constant dense<0.000000e+00> : vector<56x64xf32>
    %35 = tpu.matmul %33, %34, %cst_30 {dimension_numbers = #tpu.dot_dimension_numbers<[1], [0], [0], [1], [0, 0, 1, 1], [], []>} : vector<56x27xbf16>, vector<27x64xbf16>, vector<56x64xf32> -> vector<56x64xf32>
    %c0_31 = arith.constant 0 : index
    %c0_32 = arith.constant 0 : index
    %36 = vector.load %arg3[%c0_31, %c0_32] : memref<1x64xf32, #tpu.memory_space<vmem>>, vector<1x64xf32>
    %37 = vector.broadcast %36 : vector<1x64xf32> to vector<56x64xf32>
    %38 = arith.mulf %35, %37 : vector<56x64xf32>
    %c0_33 = arith.constant 0 : index
    %c0_34 = arith.constant 0 : index
    %39 = vector.load %arg4[%c0_33, %c0_34] : memref<1x64xf32, #tpu.memory_space<vmem>>, vector<1x64xf32>
    %40 = vector.broadcast %39 : vector<1x64xf32> to vector<56x64xf32>
    %41 = arith.addf %38, %40 : vector<56x64xf32>
    %42 = arith.maximumf %31, %41 : vector<56x64xf32>
    %cst_35 = arith.constant 0.000000e+00 : f32
    %43 = vector.broadcast %cst_35 : f32 to vector<56x64xf32>
    %44 = arith.maximumf %42, %43 : vector<56x64xf32>
    %c0_36 = arith.constant 0 : index
    %c0_37 = arith.constant 0 : index
    %45 = vector.load %arg12[%c0_36, %c0_37] : memref<72x64xf32, #tpu.memory_space<vmem>>, vector<56x64xf32>
    tpu.vector_store %arg12[%c0_36, %c0_37], %44 {strides = array<i32>} : memref<72x64xf32, #tpu.memory_space<vmem>>, vector<56x64xf32>,
    %cst_38 = arith.constant 0.000000e+00 : f32
    %46 = vector.broadcast %cst_38 : f32 to vector<16x64xf32>
    %c56_39 = arith.constant 56 : index
    %c0_40 = arith.constant 0 : index
    %47 = vector.load %arg12[%c56_39, %c0_40] : memref<72x64xf32, #tpu.memory_space<vmem>>, vector<16x64xf32>
    tpu.vector_store %arg12[%c56_39, %c0_40], %46 {strides = array<i32>} : memref<72x64xf32, #tpu.memory_space<vmem>>, vector<16x64xf32>,
    %c0_41 = arith.constant 0 : index
    %c0_42 = arith.constant 0 : index
    %48 = vector.load %arg12[%c0_41, %c0_42] : memref<72x64xf32, #tpu.memory_space<vmem>>, vector<56x64xf32>
    %49 = arith.truncf %48 : vector<56x64xf32> to vector<56x64xbf16>
    %c0_43 = arith.constant 0 : index
    %c0_44 = arith.constant 0 : index
    %50 = vector.load %arg13[%c0_43, %c0_44] : memref<56x576xbf16, #tpu.memory_space<vmem>>, vector<56x64xbf16>
    tpu.vector_store %arg13[%c0_43, %c0_44], %49 {strides = array<i32>} : memref<56x576xbf16, #tpu.memory_space<vmem>>, vector<56x64xbf16>,
    %c1 = arith.constant 1 : index
    %c0_45 = arith.constant 0 : index
    %51 = vector.load %arg12[%c1, %c0_45] : memref<72x64xf32, #tpu.memory_space<vmem>>, vector<56x64xf32>
    %52 = arith.truncf %51 : vector<56x64xf32> to vector<56x64xbf16>
    %c0_46 = arith.constant 0 : index
    %c64 = arith.constant 64 : index
    %53 = vector.load %arg13[%c0_46, %c64] : memref<56x576xbf16, #tpu.memory_space<vmem>>, vector<56x64xbf16>
    tpu.vector_store %arg13[%c0_46, %c64], %52 {strides = array<i32>} : memref<56x576xbf16, #tpu.memory_space<vmem>>, vector<56x64xbf16>,
    %c2 = arith.constant 2 : index
    %c0_47 = arith.constant 0 : index
    %54 = vector.load %arg12[%c2, %c0_47] : memref<72x64xf32, #tpu.memory_space<vmem>>, vector<56x64xf32>
    %55 = arith.truncf %54 : vector<56x64xf32> to vector<56x64xbf16>
    %c0_48 = arith.constant 0 : index
    %c128 = arith.constant 128 : index
    %56 = vector.load %arg13[%c0_48, %c128] : memref<56x576xbf16, #tpu.memory_space<vmem>>, vector<56x64xbf16>
    tpu.vector_store %arg13[%c0_48, %c128], %55 {strides = array<i32>} : memref<56x576xbf16, #tpu.memory_space<vmem>>, vector<56x64xbf16>,
    %c7 = arith.constant 7 : index
    %c0_49 = arith.constant 0 : index
    %57 = vector.load %arg12[%c7, %c0_49] : memref<72x64xf32, #tpu.memory_space<vmem>>, vector<56x64xf32>
    %58 = arith.truncf %57 : vector<56x64xf32> to vector<56x64xbf16>
    %c0_50 = arith.constant 0 : index
    %c192 = arith.constant 192 : index
    %59 = vector.load %arg13[%c0_50, %c192] : memref<56x576xbf16, #tpu.memory_space<vmem>>, vector<56x64xbf16>
    tpu.vector_store %arg13[%c0_50, %c192], %58 {strides = array<i32>} : memref<56x576xbf16, #tpu.memory_space<vmem>>, vector<56x64xbf16>,
    %c8 = arith.constant 8 : index
    %c0_51 = arith.constant 0 : index
    %60 = vector.load %arg12[%c8, %c0_51] : memref<72x64xf32, #tpu.memory_space<vmem>>, vector<56x64xf32>
    %61 = arith.truncf %60 : vector<56x64xf32> to vector<56x64xbf16>
    %c0_52 = arith.constant 0 : index
    %c256 = arith.constant 256 : index
    %62 = vector.load %arg13[%c0_52, %c256] : memref<56x576xbf16, #tpu.memory_space<vmem>>, vector<56x64xbf16>
    tpu.vector_store %arg13[%c0_52, %c256], %61 {strides = array<i32>} : memref<56x576xbf16, #tpu.memory_space<vmem>>, vector<56x64xbf16>,
    %c9 = arith.constant 9 : index
    %c0_53 = arith.constant 0 : index
    %63 = vector.load %arg12[%c9, %c0_53] : memref<72x64xf32, #tpu.memory_space<vmem>>, vector<56x64xf32>
    %64 = arith.truncf %63 : vector<56x64xf32> to vector<56x64xbf16>
    %c0_54 = arith.constant 0 : index
    %c320 = arith.constant 320 : index
    %65 = vector.load %arg13[%c0_54, %c320] : memref<56x576xbf16, #tpu.memory_space<vmem>>, vector<56x64xbf16>
    tpu.vector_store %arg13[%c0_54, %c320], %64 {strides = array<i32>} : memref<56x576xbf16, #tpu.memory_space<vmem>>, vector<56x64xbf16>,
    %c14 = arith.constant 14 : index
    %c0_55 = arith.constant 0 : index
    %66 = vector.load %arg12[%c14, %c0_55] : memref<72x64xf32, #tpu.memory_space<vmem>>, vector<56x64xf32>
    %67 = arith.truncf %66 : vector<56x64xf32> to vector<56x64xbf16>
    %c0_56 = arith.constant 0 : index
    %c384 = arith.constant 384 : index
    %68 = vector.load %arg13[%c0_56, %c384] : memref<56x576xbf16, #tpu.memory_space<vmem>>, vector<56x64xbf16>
    tpu.vector_store %arg13[%c0_56, %c384], %67 {strides = array<i32>} : memref<56x576xbf16, #tpu.memory_space<vmem>>, vector<56x64xbf16>,
    %c15 = arith.constant 15 : index
    %c0_57 = arith.constant 0 : index
    %69 = vector.load %arg12[%c15, %c0_57] : memref<72x64xf32, #tpu.memory_space<vmem>>, vector<56x64xf32>
    %70 = arith.truncf %69 : vector<56x64xf32> to vector<56x64xbf16>
    %c0_58 = arith.constant 0 : index
    %c448 = arith.constant 448 : index
    %71 = vector.load %arg13[%c0_58, %c448] : memref<56x576xbf16, #tpu.memory_space<vmem>>, vector<56x64xbf16>
    tpu.vector_store %arg13[%c0_58, %c448], %70 {strides = array<i32>} : memref<56x576xbf16, #tpu.memory_space<vmem>>, vector<56x64xbf16>,
    %c16 = arith.constant 16 : index
    %c0_59 = arith.constant 0 : index
    %72 = vector.load %arg12[%c16, %c0_59] : memref<72x64xf32, #tpu.memory_space<vmem>>, vector<56x64xf32>
    %73 = arith.truncf %72 : vector<56x64xf32> to vector<56x64xbf16>
    %c0_60 = arith.constant 0 : index
    %c512 = arith.constant 512 : index
    %74 = vector.load %arg13[%c0_60, %c512] : memref<56x576xbf16, #tpu.memory_space<vmem>>, vector<56x64xbf16>
    tpu.vector_store %arg13[%c0_60, %c512], %73 {strides = array<i32>} : memref<56x576xbf16, #tpu.memory_space<vmem>>, vector<56x64xbf16>,
    %c0_61 = arith.constant 0 : index
    %c0_62 = arith.constant 0 : index
    %75 = vector.load %arg13[%c0_61, %c0_62] : memref<56x576xbf16, #tpu.memory_space<vmem>>, vector<56x576xbf16>
    %c0_63 = arith.constant 0 : index
    %c0_64 = arith.constant 0 : index
    %76 = vector.load %arg5[%c0_63, %c0_64] : memref<576x64xbf16, #tpu.memory_space<vmem>>, vector<576x64xbf16>
    %cst_65 = arith.constant dense<0.000000e+00> : vector<56x64xf32>
    %77 = tpu.matmul %75, %76, %cst_65 {dimension_numbers = #tpu.dot_dimension_numbers<[1], [0], [0], [1], [0, 0, 1, 1], [], []>} : vector<56x576xbf16>, vector<576x64xbf16>, vector<56x64xf32> -> vector<56x64xf32>
    %c0_66 = arith.constant 0 : index
    %c0_67 = arith.constant 0 : index
    %78 = vector.load %arg6[%c0_66, %c0_67] : memref<1x64xf32, #tpu.memory_space<vmem>>, vector<1x64xf32>
    %79 = vector.broadcast %78 : vector<1x64xf32> to vector<56x64xf32>
    %80 = arith.mulf %77, %79 : vector<56x64xf32>
    %c0_68 = arith.constant 0 : index
    %c0_69 = arith.constant 0 : index
    %81 = vector.load %arg7[%c0_68, %c0_69] : memref<1x64xf32, #tpu.memory_space<vmem>>, vector<1x64xf32>
    %82 = vector.broadcast %81 : vector<1x64xf32> to vector<56x64xf32>
    %83 = arith.addf %80, %82 : vector<56x64xf32>
    %cst_70 = arith.constant 0.000000e+00 : f32
    %84 = vector.broadcast %cst_70 : f32 to vector<56x64xf32>
    %85 = arith.maximumf %83, %84 : vector<56x64xf32>
    %c0_71 = arith.constant 0 : index
    %c0_72 = arith.constant 0 : index
    %86 = vector.load %arg8[%c0_71, %c0_72] : memref<56x1xf32, #tpu.memory_space<vmem>>, vector<56x1xf32>
    %87 = vector.broadcast %86 : vector<56x1xf32> to vector<56x64xf32>
    %88 = arith.mulf %85, %87 : vector<56x64xf32>
    %cst_73 = arith.constant dense<0.000000e+00> : vector<64xf32>
    %89 = vector.multi_reduction <add>, %88, %cst_73 [0] : vector<56x64xf32> to vector<64xf32>
    %90 = vector.shape_cast %89 : vector<64xf32> to vector<1x64xf32>
    %c0_74 = arith.constant 0 : index
    %c0_75 = arith.constant 0 : index
    %91 = vector.load %arg9[%c0_74, %c0_75] : memref<64x6xf32, #tpu.memory_space<vmem>>, vector<64x6xf32>
    %cst_76 = arith.constant dense<0.000000e+00> : vector<1x6xf32>
    %92 = tpu.matmul %90, %91, %cst_76 {dimension_numbers = #tpu.dot_dimension_numbers<[1], [0], [0], [1], [0, 0, 1, 1], [], []>} : vector<1x64xf32>, vector<64x6xf32>, vector<1x6xf32> -> vector<1x6xf32>
    %c0_77 = arith.constant 0 : index
    %c0_78 = arith.constant 0 : index
    %93 = vector.load %arg10[%c0_77, %c0_78] : memref<1x6xf32, #tpu.memory_space<vmem>>, vector<1x6xf32>
    %94 = arith.addf %92, %93 : vector<1x6xf32>
    %cst_79 = arith.constant dense<0xFF800000> : vector<1xf32>
    %95 = vector.multi_reduction <maximumf>, %94, %cst_79 [1] : vector<1x6xf32> to vector<1xf32>
    %96 = vector.shape_cast %95 : vector<1xf32> to vector<1x1xf32>
    %97 = vector.broadcast %96 : vector<1x1xf32> to vector<1x6xf32>
    %98 = arith.subf %94, %97 : vector<1x6xf32>
    %99 = math.exp %98 : vector<1x6xf32>
    %cst_80 = arith.constant dense<0.000000e+00> : vector<1xf32>
    %100 = vector.multi_reduction <add>, %99, %cst_80 [1] : vector<1x6xf32> to vector<1xf32>
    %101 = vector.shape_cast %100 : vector<1xf32> to vector<1x1xf32>
    %102 = tpu.reciprocal %101 {approx = true} : vector<1x1xf32> -> vector<1x1xf32>
    %103 = arith.mulf %101, %102 : vector<1x1xf32>
    %cst_81 = arith.constant 2.000000e+00 : f32
    %104 = vector.broadcast %cst_81 : f32 to vector<1x1xf32>
    %105 = arith.subf %104, %103 : vector<1x1xf32>
    %106 = arith.mulf %102, %105 : vector<1x1xf32>
    %107 = vector.broadcast %106 : vector<1x1xf32> to vector<1x6xf32>
    %108 = arith.mulf %99, %107 : vector<1x6xf32>
    %c0_82 = arith.constant 0 : index
    %c0_83 = arith.constant 0 : index
    %c0_84 = arith.constant 0 : index
    %109 = vector.load %arg11[%c0_82, %c0_83, %c0_84] : memref<1x1x6xf32, #tpu.memory_space<vmem>>, vector<1x1x6xf32>
    %110 = vector.shape_cast %109 : vector<1x1x6xf32> to vector<1x6xf32>
    %111 = vector.shape_cast %108 : vector<1x6xf32> to vector<1x1x6xf32>
    tpu.vector_store %arg11[%c0_82, %c0_83, %c0_84], %111 {strides = array<i32>} : memref<1x1x6xf32, #tpu.memory_space<vmem>>, vector<1x1x6xf32>,
    return
  }
  func.func @transform_0(%arg0: i32) -> (i32, i32, i32) {
    %c0_i32 = arith.constant 0 : i32
    %c0_i32_0 = arith.constant 0 : i32
    %c0_i32_1 = arith.constant 0 : i32
    return %arg0, %c0_i32, %c0_i32_0 : i32, i32, i32
  }
  func.func @transform_1(%arg0: i32) -> (i32, i32) {
    %c0_i32 = arith.constant 0 : i32
    %c0_i32_0 = arith.constant 0 : i32
    %c0_i32_1 = arith.constant 0 : i32
    return %c0_i32, %c0_i32_0 : i32, i32
  }
  func.func @transform_2(%arg0: i32) -> (i32, i32) {
    %c0_i32 = arith.constant 0 : i32
    %c0_i32_0 = arith.constant 0 : i32
    %c0_i32_1 = arith.constant 0 : i32
    return %c0_i32, %c0_i32_0 : i32, i32
  }
  func.func @transform_3(%arg0: i32) -> (i32, i32) {
    %c0_i32 = arith.constant 0 : i32
    %c0_i32_0 = arith.constant 0 : i32
    %c0_i32_1 = arith.constant 0 : i32
    return %c0_i32, %c0_i32_0 : i32, i32
  }
  func.func @transform_4(%arg0: i32) -> (i32, i32) {
    %c0_i32 = arith.constant 0 : i32
    %c0_i32_0 = arith.constant 0 : i32
    %c0_i32_1 = arith.constant 0 : i32
    return %c0_i32, %c0_i32_0 : i32, i32
  }
  func.func @transform_5(%arg0: i32) -> (i32, i32) {
    %c0_i32 = arith.constant 0 : i32
    %c0_i32_0 = arith.constant 0 : i32
    %c0_i32_1 = arith.constant 0 : i32
    return %c0_i32, %c0_i32_0 : i32, i32
  }
  func.func @transform_6(%arg0: i32) -> (i32, i32) {
    %c0_i32 = arith.constant 0 : i32
    %c0_i32_0 = arith.constant 0 : i32
    %c0_i32_1 = arith.constant 0 : i32
    return %c0_i32, %c0_i32_0 : i32, i32
  }
  func.func @transform_7(%arg0: i32) -> (i32, i32) {
    %c0_i32 = arith.constant 0 : i32
    %c0_i32_0 = arith.constant 0 : i32
    %c0_i32_1 = arith.constant 0 : i32
    return %c0_i32, %c0_i32_0 : i32, i32
  }
  func.func @transform_8(%arg0: i32) -> (i32, i32) {
    %c0_i32 = arith.constant 0 : i32
    %c0_i32_0 = arith.constant 0 : i32
    %c0_i32_1 = arith.constant 0 : i32
    return %c0_i32, %c0_i32_0 : i32, i32
  }
  func.func @transform_9(%arg0: i32) -> (i32, i32) {
    %c0_i32 = arith.constant 0 : i32
    %c0_i32_0 = arith.constant 0 : i32
    %c0_i32_1 = arith.constant 0 : i32
    return %c0_i32, %c0_i32_0 : i32, i32
  }
  func.func @transform_10(%arg0: i32) -> (i32, i32, i32) {
    %c0_i32 = arith.constant 0 : i32
    %c0_i32_0 = arith.constant 0 : i32
    %c0_i32_1 = arith.constant 0 : i32
    return %arg0, %c0_i32, %c0_i32_0 : i32, i32, i32
  }
}

</mosaic_0001>

<bundles_post_ra>
// kernel: convnet_forward.1
= control target key start
LH: loop header
LB: loop body
LE: loop exit
PB: predicated region body
PF: predicated region fallthrough
CT: control target
= control target key end

     0   :  { %15 = vsyncpa [#allocation5], 0  ;;  %s2883_s0 = inlined_call_operand.vmem [shape: bf16[2,224,27], index: 0, kind: input, shape index: {}]   ;;  %s2884_s1 = inlined_call_operand.vmem [shape: bf16[27,64], index: 1, kind: input, shape index: {}]   ;;  %s2885_s2 = inlined_call_operand.vmem [shape: f32[1,64], index: 2, kind: input, shape index: {}]   ;;  %s2886_s3 = inlined_call_operand.vmem [shape: f32[1,64], index: 3, kind: input, shape index: {}]   ;;  %s2887_s4 = inlined_call_operand.vmem [shape: bf16[576,64], index: 4, kind: input, shape index: {}]   ;;  %s2888_s5 = inlined_call_operand.vmem [shape: f32[1,64], index: 5, kind: input, shape index: {}]   ;;  %s2889_s6 = inlined_call_operand.vmem [shape: f32[1,64], index: 6, kind: input, shape index: {}]   ;;  %s2890_s7 = inlined_call_operand.vmem [shape: f32[56,1], index: 7, kind: input, shape index: {}]   ;;  %s2891_s8 = inlined_call_operand.vmem [shape: f32[64,6], index: 8, kind: input, shape index: {}]   ;;  %s2892_s9 = inlined_call_operand.vmem [shape: f32[1,6], index: 9, kind: input, shape index: {}]   ;;  %s2893_s10 = inlined_call_operand.hbm [shape: f32[2,1,6], index: 10, kind: output, shape index: {}]  }
   0x1   :  { %17 = vsyncpa [#allocation5 + $0x1], 0  ;;  %s2345_s13 = smov 0   ;;  %s2347_s14 = smov 0  }
   0x2   :  { %s2349_s15 = smov 0   ;;  %s2351_s16 = smov 0  }
   0x3 LB: > { %s2366_s17 = sadd.s32 4294967295, %s2284_s16   ;;  %s1812_s18 = sadd.s32 4294967294, %s2284_s16   ;;  %s2284_s16 = sphi %s2351_s16, %s2899_s16   ;;  %s2280_s15 = sphi %s2349_s15, %s2898_s15   ;;  %s2276_s14 = sphi %s2347_s14, %s2897_s14   ;;  %s2272_s13 = sphi %s2345_s13, %s2896_s13  }
   0x4   : > { %s2370_s19 = sadd.s32 1, %s2284_s16   ;;  %s245_s20 = sadd.s32 1, %s2280_s15 }
   0x5   : > { %s242_s21 = ssub.s32 %s2284_s16, %s2370_s19  ;;  %p255_p0 = scmp.ne.s32.totalorder %s2280_s15, %s2276_s14 }
   0x6   : > { %p243_p1 = scmp.eq.s32.totalorder %s242_s21, 0  ;;  %p256_p2 = scmp.eq.s32.totalorder %s2366_s17, 1 }
   0x7   : > { %p261_p3 = scmp.ne.s32.totalorder %s2276_s14, %s2272_s13  ;;  %p262_p4 = scmp.eq.s32.totalorder %s1812_s18, 1 }
   0x8   : > { %s2381_s22 = scalar_select %p243_p1, %s2280_s15, %s245_s20  }
   0x9   : > { %p2383_p5 = por %p256_p2, %p255_p0  ;;  %p2387_p6 = por %p262_p4, %p261_p3 }
   0xa   : > { %p1815_p7 = scmp.ge.s32.totalorder %s2284_s16, 1  ;;  %p315_p8 = scmp.lt.s32.totalorder %s2284_s16, 3 }
   0xc   : > { %p316_p9 = pnand %p1815_p7, %p315_p8 }
   0xd   : > { %p352_p10 = scmp.lt.s32.totalorder (!%p316_p9), %s2366_s17, 1  ;;  %s1753_s18 = scalar_lea.hbm (!%p316_p9), %s2893_s10, %s2366_s17 }
   0xe   : > { %319 = sbr.rel (%p316_p9) target bundleno = 1013 (0x3f5), region = 60  ;;  %s1757_s25 = sshll.u32 (!%p316_p9), %s1753_s18, 4  ;;  %s1758_s25 = int_to_ptr.hbm [resolvable:$true] %s1757_s25 }
   0xf   : > { %s2236_s27 = sshra.s32 (!%p316_p9), %s1758_s25, 4  ;;  %s2242_s11 = scalar_lea.hbm (!%p316_p9), %s2893_s10, 2  ;;  %s2237_s27 = int_to_ptr.hbm [resolvable:$true] %s2236_s27 }
  0x10   : > { %s2238_s28 = scalar_lea.hbm (!%p316_p9), %s2237_s27, 1  ;;  %p2243_p0 = scmp.lt.s32.totalorder (!%p316_p9), %s2237_s27, %s2893_s10 }
  0x11   : > { %p2239_p11 = scmp.ne.s32.totalorder (!%p316_p9), %s2237_s27, %s2238_s28  ;;  %p2244_p1 = scmp.lt.s32.totalorder (!%p316_p9), %s2242_s11, %s2238_s28 }
  0x13   : > { %v1835_v0 = vld [vmem:[%s2884_s1 + $0x8] sm:$0xf]  ;;  %v2104_v1 = vld [vmem:[%s2884_s1 + $0x8] sm:$0x30]  ;;  %vm411_vm0 = vcmask 1044480   ;;  %vm412_vm1 = vcmask 1045504   ;;  %p2240_p12 = pnand %p2239_p11, %p2383_p5  ;;  %p2245_p2 = por %p2244_p1, %p2243_p0 }
  0x14   : > { %v1836_v2 = vor.u32 %v2104_v1, %v1835_v0  ;;  %v2286_v3 = vmov 65535   ;;  %s353_s29 = scalar_select %p352_p10, %s2366_s17, 1  ;;  %v2103_v7 = vld [vmem:[%s2884_s1] sm:$0xff]  ;;  %vm398_vm2 = vcmask 220160   ;;  %vm733_vm3 = vcmask 523264  }
  0x15   : > { %v413_v4 = vsel %vm411_vm0, 4294967295, %v2286_v3  ;;  %v2450_v43 = vld [vmem:[%s2885_s2] ss:$0 sm:$0xff]  ;;  %vm757_vm4 = vcmask 519168   ;;  %vm807_vm5 = vcmask 1043968   ;;  %vm1728_vm6 = vcmask 40960   ;;  %p2241_p13 = pneg %p2240_p12 }
  0x16   : > { %v414_v5 = vsel %vm412_vm1, %v413_v4, 0  ;;  %s2167_s30 = smul.u32 112, %s353_s29  ;;  %v2457_v49 = vld [vmem:[%s2886_s3] ss:$0 sm:$0xff]  ;;  %s2288_s29 = smov 64  }
  0x17   : > { %v416_v6 = vand.u32 %v1836_v2, %v414_v5  ;;  %p2246_p3 = pnand %p2245_p2, %p2241_p13 }
  0x18   : > { %s2407_s21 = scalar_lea.vmem %s2883_s0, %s2167_s30  ;;  %s350_s30 = sand.u32 1, %s2276_s14  }
  0x19   : > { %2165 = vmatpush.bf16.msra.mxu2 %v416_v6  ;;  %511 = vmatpush.bf16.msra.mxu1 %v416_v6  ;;  %v2102_v8 = vld [vmem:[%s2407_s21 + $0x10] sm:$0xff]  ;;  %v2105_v9 = vld [vmem:[%s2407_s21 + $0x1c] sm:$0xff]  ;;  %v364_v12 = vld [vmem:[%s2407_s21 + $0x18] sm:$0xf]  ;;  %s351_s20 = scalar_lea.vmem [#allocation4], %s350_s30  ;;  %s1745_s26 = scalar_lea.sflag [#allocation5], %s350_s30 }
  0x1a   : > { %683 = vmatpush.bf16.msra.mxu3 %v416_v6  ;;  %424 = vmatpush.bf16.msra.mxu0 %v416_v6  ;;  %v2111_v10 = vld [vmem:[%s2407_s21 + $0x54] sm:$0xff]  ;;  %v2100_v11 = vld [vmem:[%s2407_s21] sm:$0xff]  ;;  %v382_v13 = vunpack.c.l.b16 %v364_v12  ;;  %v2101_v17 = vld [vmem:[%s2407_s21 + $0x8] sm:$0xff] }
  0x1b   : > { %v2106_v15 = vld [vmem:[%s2407_s21 + $0x24] sm:$0xff]  ;;  %v2112_v16 = vld [vmem:[%s2407_s21 + $0x5c] sm:$0xff]  ;;  %v2107_v18 = vld [vmem:[%s2407_s21 + $0x2c] sm:$0xff] }
  0x1c   : > { %v386_v14 = vpack.c.b16 %v382_v13, %v382_v13  ;;  %v2108_v19 = vld [vmem:[%s2407_s21 + $0x38] sm:$0xff]  ;;  %v2113_v20 = vld [vmem:[%s2407_s21 + $0x64] sm:$0xff]  ;;  %v474_v21 = vld [vmem:[%s2407_s21 + $0x34] sm:$0xf] }
  0x1d   : > { %2166 = vmatpush.bf16.msra.mxu2 %v2103_v7  ;;  %512 = vmatpush.bf16.msra.mxu1 %v2103_v7  ;;  %v488_v22 = vunpack.c.l.b16 %v474_v21  ;;  %v2109_v24 = vld [vmem:[%s2407_s21 + $0x40] sm:$0xff]  ;;  %v646_v25 = vld [vmem:[%s2407_s21 + $0x6c] sm:$0xf]  ;;  %v560_v29 = vld [vmem:[%s2407_s21 + $0x50] sm:$0xf] }
  0x1e   : > { %684 = vmatpush.bf16.msra.mxu3 %v2103_v7  ;;  %425 = vmatpush.bf16.msra.mxu0 %v2103_v7  ;;  %v660_v26 = vunpack.c.l.b16 %v646_v25  ;;  %v2110_v28 = vld [vmem:[%s2407_s21 + $0x48] sm:$0xff]  ;;  %v574_v30 = vunpack.c.l.b16 %v560_v29  ;;  %s1755_s21 = sshll.u32 %s351_s20, 4  ;;  %s1756_s21 = int_to_ptr.vmem [resolvable:$true] %s1755_s21 }
  0x1f   : > { %v492_v23 = vpack.c.b16 %v488_v22, %v488_v22 }
  0x20   : > { %1839 = vmatmul.msk.bf16.vlgmr.msra.gmra.mxu2 %vm398_vm2, %v2102_v8  ;;  %1853 = vmatmul.msk.bf16.vlgmr.msra.gmra.mxu1 %vm398_vm2, %v2105_v9  ;;  %v664_v27 = vpack.c.b16 %v660_v26, %v660_v26  ;;  %v578_v31 = vpack.c.b16 %v574_v30, %v574_v30 }
  0x21   : > { %597 = vmatpush.bf16.msrb.mxu2 %v416_v6  ;;  %1885 = vmatmul.msk.bf16.vlgmr.msra.gmra.mxu3 %vm398_vm2, %v2111_v10 }
  0x22   : > { %1837 = vmatmul.msk.bf16.vlgmr.msra.gmra.mxu0 %vm398_vm2, %v2100_v11 }
  0x25   : > { %598 = vmatpush.bf16.msrb.mxu2 %v2103_v7 }
  0x30   : > { %1840 = vmatmul.msk.bf16.gmra.mxu2 %vm398_vm2, %v386_v14  ;;  %1854 = vmatmul.msk.bf16.gmra.mxu1 %vm398_vm2, %v2106_v15 }
  0x31   : > { %1886 = vmatmul.msk.bf16.gmra.mxu3 %vm398_vm2, %v2112_v16 }
  0x32   : > { %1838 = vmatmul.msk.bf16.gmra.mxu0 %vm398_vm2, %v2101_v17 }
  0x40   : > { %1855 = vmatmul.msk.bf16.gmra.mxu1 %vm398_vm2, %v2107_v18  ;;  %1869 = vmatmul.msk.bf16.vlgmr.msrb.gmra.mxu2 %vm398_vm2, %v2108_v19 }
  0x41   : > { %1887 = vmatmul.msk.bf16.gmra.mxu3 %vm398_vm2, %v2113_v20 }
  0x50   : > { %1856 = vmatmul.msk.bf16.gmra.mxu1 %vm398_vm2, %v492_v23  ;;  %1870 = vmatmul.msk.bf16.gmra.mxu2 %vm398_vm2, %v2109_v24 }
  0x51   : > { %1888 = vmatmul.msk.bf16.gmra.mxu3 %vm398_vm2, %v664_v27 }
  0x60   : > { %1871 = vmatmul.msk.bf16.gmra.mxu2 %vm398_vm2, %v2110_v28 }
  0x70   : > { %1872 = vmatmul.msk.bf16.gmra.mxu2 %vm398_vm2, %v578_v31 }
  0x9d   : > { %v514_v32 = vpop.f32.mrf.mxu1 }
  0x9e   : > { %v533_v45 = vmul.f32 %v2450_v43, %v514_v32 }
  0x9f   : > { %v427_v42 = vpop.f32.mrf.mxu0 }
  0xa0   : > { %v450_v46 = vmul.f32 %v2450_v43, %v427_v42  ;;  %v540_v51 = vadd.f32 %v2457_v49, %v533_v45 }
  0xa2   : > { %v461_v52 = vadd.f32 %v2457_v49, %v450_v46 }
  0xa3   : > { %v2441_v33 = vpop.f32.mrf.mxu2 }
  0xa4   : > { %v686_v34 = vpop.f32.mrf.mxu3  ;;  %v547_v55 = vmax.f32 %v461_v52, %v540_v51 }
  0xa5   : > { %v516_v35 = vpop.f32.mrf.mxu1  ;;  %v705_v53 = vmul.f32 %v2450_v43, %v686_v34 }
  0xa6   : > { %v534_v59 = vmul.f32 %v2450_v43, %v516_v35 }
  0xa7   : > { %v429_v50 = vpop.f32.mrf.mxu0  ;;  %v712_v60 = vadd.f32 %v2457_v49, %v705_v53 }
  0xa8   : > { %v451_v61 = vmul.f32 %v2450_v43, %v429_v50  ;;  %v541_v1 = vadd.f32 %v2457_v49, %v534_v59  ;;  %v454_v59 = vmul.f32 %v2450_v43, %v2441_v33 }
  0xaa   : > { %v462_v2 = vadd.f32 %v2457_v49, %v451_v61 }
  0xab   : > { %v2443_v36 = vpop.f32.mrf.mxu2 }
  0xac   : > { %v688_v37 = vpop.f32.mrf.mxu3  ;;  %v548_v12 = vmax.f32 %v462_v2, %v541_v1 }
  0xad   : > { %v519_v38 = vpop.f32.mrf.mxu1  ;;  %v706_v4 = vmul.f32 %v2450_v43, %v688_v37 }
  0xae   : > { %v535_v6 = vmul.f32 %v2450_v43, %v519_v38 }
  0xaf   : > { %v432_v0 = vpop.f32.mrf.mxu0  ;;  %v713_v15 = vadd.f32 %v2457_v49, %v706_v4 }
  0xb0   : > { %v452_v8 = vmul.f32 %v2450_v43, %v432_v0  ;;  %v542_v14 = vadd.f32 %v2457_v49, %v535_v6  ;;  %v465_v0 = vadd.f32 %v2457_v49, %v454_v59 }
  0xb2   : > { %v463_v16 = vadd.f32 %v2457_v49, %v452_v8 }
  0xb3   : > { %v2445_v39 = vpop.f32.mrf.mxu2 }
  0xb4   : > { %v691_v40 = vpop.f32.mrf.mxu3  ;;  %v549_v22 = vmax.f32 %v463_v16, %v542_v14  ;;  %v455_v16 = vmul.f32 %v2450_v43, %v2443_v36 }
  0xb5   : > { %v521_v41 = vpop.f32.mrf.mxu1  ;;  %v707_v19 = vmul.f32 %v2450_v43, %v691_v40 }
  0xb6   : > { %v536_v25 = vmul.f32 %v2450_v43, %v521_v41  ;;  %v466_v36 = vadd.f32 %v2457_v49, %v455_v16 }
  0xb7   : > { %v434_v20 = vpop.f32.mrf.mxu0  ;;  %v714_v29 = vadd.f32 %v2457_v49, %v707_v19 }
  0xb8   : > { %v453_v30 = vmul.f32 %v2450_v43, %v434_v20  ;;  %v543_v35 = vadd.f32 %v2457_v49, %v536_v25 }
  0xba   : > { %v464_v37 = vadd.f32 %v2457_v49, %v453_v30 }
  0xbb   : > { %v444_v44 = vpop.f32.mrf.mxu2 }
  0xbc   : > { %v693_v47 = vpop.f32.mrf.mxu3  ;;  %v550_v52 = vmax.f32 %v464_v37, %v543_v35  ;;  %v456_v37 = vmul.f32 %v2450_v43, %v2445_v39 }
  0xbd   : > { %v524_v48 = vpop.f32.mrf.mxu1  ;;  %v708_v42 = vmul.f32 %v2450_v43, %v693_v47 }
  0xbe   : > { %v537_v45 = vmul.f32 %v2450_v43, %v524_v48 }
  0xbf   : > { %v715_v48 = vadd.f32 %v2457_v49, %v708_v42 }
  0xc3   : > { %v600_v54 = vpop.f32.mrf.mxu2 }
  0xc4   : > { %v619_v56 = vmul.f32 %v2450_v43, %v600_v54  ;;  %v2463_v57 = vpop.f32.mrf.mxu3 }
  0xc5   : > { %v2465_v58 = vpop.f32.mrf.mxu1  ;;  %v709_v33 = vmul.f32 %v2450_v43, %v2463_v57 }
  0xc6   : > { %v626_v62 = vadd.f32 %v2457_v49, %v619_v56 }
  0xc7   : > { %v716_v57 = vadd.f32 %v2457_v49, %v709_v33 }
  0xc8   : > { %v633_v63 = vmax.f32 %v547_v55, %v626_v62  ;;  %v544_v62 = vadd.f32 %v2457_v49, %v537_v45  ;;  %v467_v45 = vadd.f32 %v2457_v49, %v456_v37  ;;  %v2133_v37 = vld [vmem:[%s2887_s4 + $0x20] sm:$0xff] }
  0xca   : > { %v719_v3 = vmax.f32 %v633_v63, %v712_v60  ;;  %v2287_v60 = vmov 0.0   ;;  %v551_v4 = vmax.f32 %v465_v0, %v544_v62 }
  0xcb   : > { %v602_v5 = vpop.f32.mrf.mxu2  ;;  %741 = vst.msk [vmem:[#allocation2 + $0x38] sm:$0xff] %vm733_vm3, %v2287_v60 }
  0xcc   : > { %v726_v7 = vmax.f32 %v719_v3, 0.0  ;;  %v620_v9 = vmul.f32 %v2450_v43, %v602_v5  ;;  %v2479_v11 = vpop.f32.mrf.mxu3  ;;  %742 = vst.msk [vmem:[#allocation2 + $0x40] sm:$0xff] %vm733_vm3, %v2287_v60  ;;  %v538_v5 = vmul.f32 %v2450_v43, %v2465_v58 }
  0xcd   : > { %v2477_v10 = vpop.f32.mrf.mxu1 }
  0xce   : > { %734 = vst.msk [vmem:[#allocation2] sm:$0xff] %vm733_vm3, %v726_v7  ;;  %v627_v13 = vadd.f32 %v2457_v49, %v620_v9 }
  0xd0   : > { %v634_v17 = vmax.f32 %v548_v12, %v627_v13 }
  0xd2   : > { %v720_v18 = vmax.f32 %v634_v17, %v713_v15  ;;  %v891_v20 = vld [vmem:[#allocation2 + $0x38] sm:$0xff] }
  0xd3   : > { %v605_v21 = vpop.f32.mrf.mxu2 }
  0xd4   : > { %v727_v23 = vmax.f32 %v720_v18, 0.0  ;;  %v621_v24 = vmul.f32 %v2450_v43, %v605_v21  ;;  %v2489_v26 = vpop.f32.mrf.mxu3  ;;  %v545_v18 = vadd.f32 %v2457_v49, %v538_v5 }
  0xd5   : > { %v531_v27 = vpop.f32.mrf.mxu1  ;;  %v743_v28 = vld [vmem:[#allocation2] sm:$0xff]  ;;  %v711_v39 = vmul.f32 %v2450_v43, %v2489_v26 }
  0xd6   : > { %735 = vst.msk [vmem:[#allocation2 + $0x8] sm:$0xff] %vm733_vm3, %v727_v23  ;;  %v628_v31 = vadd.f32 %v2457_v49, %v621_v24  ;;  %v750_v32 = vpack.c.bf16 %v743_v28, %v743_v28  ;;  %v710_v24 = vmul.f32 %v2450_v43, %v2479_v11  ;;  %v539_v27 = vmul.f32 %v2450_v43, %v2477_v10 }
  0xd7   : > { %v552_v30 = vmax.f32 %v466_v36, %v545_v18  ;;  %v718_v26 = vadd.f32 %v2457_v49, %v711_v39 }
  0xd8   : > { %v635_v34 = vmax.f32 %v549_v22, %v628_v31  ;;  %758 = vst.msk [vmem:[#allocation3] sm:$0xf] %vm757_vm4, %v750_v32  ;;  %v898_v22 = vpack.c.bf16 %v891_v20, %v891_v20  ;;  %v717_v10 = vadd.f32 %v2457_v49, %v710_v24  ;;  %v546_v42 = vadd.f32 %v2457_v49, %v539_v27 }
  0xda   : > { %v721_v38 = vmax.f32 %v635_v34, %v714_v29  ;;  %905 = vst.msk [vmem:[#allocation3 + $0x80] sm:$0xf] %vm757_vm4, %v898_v22 }
  0xdb   : > { %v607_v40 = vpop.f32.mrf.mxu2  ;;  %1044 = vst.msk [vmem:[#allocation3 + $0x74] sm:$0xf] %vm757_vm4, %v898_v22 }
  0xdc   : > { %v728_v41 = vmax.f32 %v721_v38, 0.0  ;;  %v622_v44 = vmul.f32 %v2450_v43, %v607_v40  ;;  %v703_v50 = vpop.f32.mrf.mxu3 }
  0xdd   : > { %v765_v46 = vld [vmem:[#allocation2 + $0x1] sm:$0xff] }
  0xde   : > { %v744_v51 = vld [vmem:[#allocation2 + $0x8] sm:$0xff]  ;;  %736 = vst.msk [vmem:[#allocation2 + $0x10] sm:$0xff] %vm733_vm3, %v728_v41  ;;  %v629_v53 = vadd.f32 %v2457_v49, %v622_v44  ;;  %v772_v54 = vpack.c.bf16 %v765_v46, %v765_v46 }
  0xdf   : > { %v751_v55 = vpack.c.bf16 %v744_v51, %v744_v51  ;;  %v815_v56 = vld [vmem:[#allocation2 + $0x2] sm:$0xff] }
  0xe0   : > { %v822_v47 = vpack.c.bf16 %v815_v56, %v815_v56  ;;  %v636_v61 = vmax.f32 %v550_v52, %v629_v53  ;;  %786 = vrot.lane.b32.xlu0 %v772_v54, %s2288_s29  ;;  %v553_v52 = vmax.f32 %v467_v45, %v546_v42  ;;  %v836_v27 = vld [vmem:[#allocation2 + $0x7] sm:$0xff]  ;;  %v982_v42 = vld [vmem:[#allocation2 + $0x3f] sm:$0xff] }
  0xe1   : > { %759 = vst.msk [vmem:[#allocation3 + $0x14] sm:$0xf] %vm757_vm4, %v751_v55  ;;  %v989_v39 = vpack.c.bf16 %v982_v42, %v982_v42 }
  0xe2   : > { %v722_v63 = vmax.f32 %v636_v61, %v715_v48  ;;  %899 = vst.msk [vmem:[#allocation3 + $0x8] sm:$0xf] %vm757_vm4, %v751_v55 }
  0xe3   : > { %v610_v1 = vpop.f32.mrf.mxu2  ;;  %829 = vst.msk [vmem:[#allocation3 + $0x4] sm:$0xf] %vm757_vm4, %v822_v47 }
  0xe4   : > { %v729_v2 = vmax.f32 %v722_v63, 0.0  ;;  %v623_v3 = vmul.f32 %v2450_v43, %v610_v1 }
  0xe5   : > { %v1025_v6 = vld [vmem:[#allocation2 + $0x10] sm:$0xff] }
  0xe6   : > { %v766_v7 = vld [vmem:[#allocation2 + $0x9] sm:$0xff]  ;;  %v1032_v8 = vpack.c.bf16 %v1025_v6, %v1025_v6  ;;  %737 = vst.msk [vmem:[#allocation2 + $0x18] sm:$0xff] %vm733_vm3, %v729_v2  ;;  %v630_v9 = vadd.f32 %v2457_v49, %v623_v3 }
  0xe7   : > { %v2522_v12 = vpack.c.bf16 %v766_v7, %v766_v7  ;;  %v955_v13 = vld [vmem:[#allocation2 + $0xe] sm:$0xff] }
  0xe8   : > { %v816_v14 = vld [vmem:[#allocation2 + $0xa] sm:$0xff]  ;;  %v962_v15 = vpack.c.bf16 %v955_v13, %v955_v13  ;;  %1039 = vst.msk [vmem:[#allocation3 + $0x10] sm:$0xf] %vm757_vm4, %v1032_v8  ;;  %v637_v58 = vmax.f32 %v551_v4, %v630_v9 }
  0xe9   : > { %788 = vrot.lane.b32.xlu0 %v2522_v12, %s2288_s29  ;;  %v823_v17 = vpack.c.bf16 %v816_v14, %v816_v14  ;;  %760 = vst.msk [vmem:[#allocation3 + $0x28] sm:$0xf] %vm757_vm4, %v1032_v8 }
  0xea   : > { %v723_v19 = vmax.f32 %v637_v58, %v716_v57  ;;  %900 = vst.msk [vmem:[#allocation3 + $0x1c] sm:$0xf] %vm757_vm4, %v1032_v8 }
  0xeb   : > { %v612_v21 = vpop.f32.mrf.mxu2  ;;  %969 = vst.msk [vmem:[#allocation3 + $0xc] sm:$0xf] %vm757_vm4, %v962_v15 }
  0xec   : > { %v730_v23 = vmax.f32 %v723_v19, 0.0  ;;  %v624_v25 = vmul.f32 %v2450_v43, %v612_v21  ;;  %830 = vst.msk [vmem:[#allocation3 + $0x18] sm:$0xf] %vm757_vm4, %v823_v17 }
  0xed   : > { %v1026_v28 = vld [vmem:[#allocation2 + $0x18] sm:$0xff] }
  0xee   : > { %v767_v29 = vld [vmem:[#allocation2 + $0x11] sm:$0xff]  ;;  %v1033_v31 = vpack.c.bf16 %v1026_v28, %v1026_v28  ;;  %738 = vst.msk [vmem:[#allocation2 + $0x20] sm:$0xff] %vm733_vm3, %v730_v23  ;;  %v631_v32 = vadd.f32 %v2457_v49, %v624_v25 }
  0xef   : > { %v2543_v34 = vpack.c.bf16 %v767_v29, %v767_v29  ;;  %v956_v11 = vld [vmem:[#allocation2 + $0x16] sm:$0xff]  ;;  %v843_v29 = vpack.c.bf16 %v836_v27, %v836_v27 }
  0xf0   : > { %v817_v35 = vld [vmem:[#allocation2 + $0x12] sm:$0xff]  ;;  %v963_v38 = vpack.c.bf16 %v956_v11, %v956_v11  ;;  %1040 = vst.msk [vmem:[#allocation3 + $0x24] sm:$0xf] %vm757_vm4, %v1033_v31  ;;  %v638_v40 = vmax.f32 %v552_v30, %v631_v32 }
  0xf1   : > { %790 = vrot.lane.b32.xlu1 %v2543_v34, %s2288_s29  ;;  %v824_v41 = vpack.c.bf16 %v817_v35, %v817_v35  ;;  %761 = vst.msk [vmem:[#allocation3 + $0x3c] sm:$0xf] %vm757_vm4, %v1033_v31  ;;  %v976_v23 = vld [vmem:[#allocation2 + $0xf] sm:$0xff]  ;;  %v977_v25 = vld [vmem:[#allocation2 + $0x17] sm:$0xff] }
  0xf2   : > { %v724_v44 = vmax.f32 %v638_v40, %v717_v10  ;;  %970 = vst.msk [vmem:[#allocation3 + $0x20] sm:$0xf] %vm757_vm4, %v963_v38  ;;  %v983_v24 = vpack.c.bf16 %v976_v23, %v976_v23  ;;  %v984_v28 = vpack.c.bf16 %v977_v25, %v977_v25  ;;  %v2135_v32 = vld [vmem:[%s2887_s4 + $0x30] sm:$0xff]  ;;  %v2134_v35 = vld [vmem:[%s2887_s4 + $0x28] sm:$0xff]  ;;  %v2132_v40 = vld [vmem:[%s2887_s4 + $0x18] sm:$0xff] }
  0xf3   : > { %v615_v46 = vpop.f32.mrf.mxu2  ;;  %901 = vst.msk [vmem:[#allocation3 + $0x30] sm:$0xf] %vm757_vm4, %v1033_v31 }
  0xf4   : > { %v731_v50 = vmax.f32 %v724_v44, 0.0  ;;  %v625_v51 = vmul.f32 %v2450_v43, %v615_v46  ;;  %831 = vst.msk [vmem:[#allocation3 + $0x2c] sm:$0xf] %vm757_vm4, %v824_v41  ;;  %v2131_v41 = vld [vmem:[%s2887_s4 + $0x10] sm:$0xff]  ;;  %v912_v44 = vld [vmem:[#allocation2 + $0x39] sm:$0xff] }
  0xf5   : > { %v768_v53 = vld [vmem:[#allocation2 + $0x19] sm:$0xff]  ;;  %v919_v45 = vpack.c.bf16 %v912_v44, %v912_v44 }
  0xf6   : > { %v747_v54 = vld [vmem:[#allocation2 + $0x20] sm:$0xff]  ;;  %739 = vst.msk [vmem:[#allocation2 + $0x28] sm:$0xff] %vm733_vm3, %v731_v50  ;;  %v632_v55 = vadd.f32 %v2457_v49, %v625_v51  ;;  %v2564_v56 = vpack.c.bf16 %v768_v53, %v768_v53  ;;  %v2152_v46 = vld [vmem:[%s2887_s4 + $0xb8] sm:$0xff]  ;;  %v2130_v50 = vld [vmem:[%s2887_s4 + $0x8] sm:$0xff] }
  0xf7   : > { %v754_v59 = vpack.c.bf16 %v747_v54, %v747_v54  ;;  %v957_v60 = vld [vmem:[#allocation2 + $0x1e] sm:$0xff]  ;;  %1515 = vmatpush.bf16.msra.mxu2 %v2152_v46  ;;  %v2151_v54 = vld [vmem:[%s2887_s4 + $0xb0] sm:$0xff] }
  0xf8   : > { %v818_v47 = vld [vmem:[#allocation2 + $0x1a] sm:$0xff]  ;;  %v964_v48 = vpack.c.bf16 %v957_v60, %v957_v60  ;;  %v639_v62 = vmax.f32 %v553_v52, %v632_v55  ;;  %v2159_v55 = vld [vmem:[%s2887_s4 + $0xf0] sm:$0xff]  ;;  %v2158_v60 = vld [vmem:[%s2887_s4 + $0xe8] sm:$0xff] }
  0xf9   : > { %v825_v61 = vpack.c.bf16 %v818_v47, %v818_v47  ;;  %792 = vrot.lane.b32.xlu1 %v2564_v56, %s2288_s29  ;;  %762 = vst.msk [vmem:[#allocation3 + $0x50] sm:$0xf] %vm757_vm4, %v754_v59  ;;  %v978_v30 = vld [vmem:[#allocation2 + $0x1f] sm:$0xff]  ;;  %v2142_v47 = vld [vmem:[%s2887_s4 + $0x68] sm:$0xff] }
  0xfa   : > { %902 = vst.msk [vmem:[#allocation3 + $0x44] sm:$0xf] %vm757_vm4, %v754_v59  ;;  %v725_v43 = vmax.f32 %v639_v62, %v718_v26  ;;  %v985_v31 = vpack.c.bf16 %v978_v30, %v978_v30  ;;  %v2160_v51 = vld [vmem:[%s2887_s4 + $0xf8] sm:$0xff]  ;;  %v2129_v53 = vld [vmem:[%s2887_s4] sm:$0xff] }
  0xfb   : > { %971 = vst.msk [vmem:[#allocation3 + $0x34] sm:$0xf] %vm757_vm4, %v964_v48  ;;  %v617_v63 = vpop.f32.mrf.mxu2  ;;  %v2144_v52 = vld [vmem:[%s2887_s4 + $0x78] sm:$0xff]  ;;  %1543 = vmatpush.bf16.msrb.mxu3 %v2160_v51  ;;  %1516 = vmatpush.bf16.msra.mxu2 %v2151_v54  ;;  %v2157_v62 = vld [vmem:[%s2887_s4 + $0xe0] sm:$0xff] }
  0xfc   : > { %832 = vst.msk [vmem:[#allocation3 + $0x40] sm:$0xf] %vm757_vm4, %v825_v61  ;;  %v732_v49 = vmax.f32 %v725_v43, 0.0  ;;  %1487 = vmatpush.bf16.msrb.mxu1 %v2144_v52  ;;  %v2164_v26 = vld [vmem:[%s2887_s4 + $0x118] sm:$0xff]  ;;  %v2149_v61 = vld [vmem:[%s2887_s4 + $0xa0] sm:$0xff]  ;;  %v2163_v43 = vld [vmem:[%s2887_s4 + $0x110] sm:$0xff] }
  0xfd   : > { %1041 = vst.msk [vmem:[#allocation3 + $0x38] sm:$0xf] %vm757_vm4, %v754_v59  ;;  %v769_v33 = vld [vmem:[#allocation2 + $0x21] sm:$0xff] }
  0xfe   : > { %v748_v0 = vld [vmem:[#allocation2 + $0x28] sm:$0xff]  ;;  %740 = vst.msk [vmem:[#allocation2 + $0x30] sm:$0xff] %vm733_vm3, %v732_v49  ;;  %v776_v1 = vpack.c.bf16 %v769_v33, %v769_v33  ;;  %v2141_v63 = vld [vmem:[%s2887_s4 + $0x60] sm:$0xff] }
  0xff   : > { %v755_v2 = vpack.c.bf16 %v748_v0, %v748_v0  ;;  %v958_v3 = vld [vmem:[#allocation2 + $0x26] sm:$0xff]  ;;  %1544 = vmatpush.bf16.msrb.mxu3 %v2159_v55  ;;  %v2148_v0 = vld [vmem:[%s2887_s4 + $0x98] sm:$0xff] }
 0x100   : > { %v819_v4 = vld [vmem:[#allocation2 + $0x22] sm:$0xff]  ;;  %v965_v5 = vpack.c.bf16 %v958_v3, %v958_v3  ;;  %794 = vrot.lane.b32.xlu2 %v776_v1, %s2288_s29  ;;  %v2147_v3 = vld [vmem:[%s2887_s4 + $0x90] sm:$0xff] }
 0x101   : > { %v826_v6 = vpack.c.bf16 %v819_v4, %v819_v4  ;;  %763 = vst.msk [vmem:[#allocation3 + $0x64] sm:$0xf] %vm757_vm4, %v755_v2  ;;  %v2150_v59 = vld [vmem:[%s2887_s4 + $0xa8] sm:$0xff]  ;;  %v2155_v4 = vld [vmem:[%s2887_s4 + $0xd0] sm:$0xff] }
 0x102   : > { %972 = vst.msk [vmem:[#allocation3 + $0x48] sm:$0xf] %vm757_vm4, %v965_v5  ;;  %1517 = vmatpush.bf16.msra.mxu2 %v2150_v59  ;;  %v1628_v59 = vld [vmem:[%s2890_s7] sm:$0xff] }
 0x103   : > { %903 = vst.msk [vmem:[#allocation3 + $0x58] sm:$0xf] %vm757_vm4, %v755_v2  ;;  %1545 = vmatpush.bf16.msrb.mxu3 %v2158_v60  ;;  %v2289_v60 = vmov 0  }
 0x104   : > { %833 = vst.msk [vmem:[#allocation3 + $0x54] sm:$0xf] %vm757_vm4, %v826_v6  ;;  %2211 = vset.pattern.permute.xlu1 %v2289_v60  ;;  %2213 = vset.pattern.permute.xlu0 %v2289_v60 }
 0x105   : > { %1042 = vst.msk [vmem:[#allocation3 + $0x4c] sm:$0xf] %vm757_vm4, %v755_v2  ;;  %v1029_v7 = vld [vmem:[#allocation2 + $0x30] sm:$0xff]  ;;  %v2140_v2 = vld [vmem:[%s2887_s4 + $0x58] sm:$0xff]  ;;  %2212 = vset.pattern.permute.xlu2 %v2289_v60 }
 0x106   : > { %v770_v8 = vld [vmem:[#allocation2 + $0x29] sm:$0xff]  ;;  %v771_v57 = vld [vmem:[#allocation2 + $0x31] sm:$0xff]  ;;  %v756_v15 = vpack.c.bf16 %v1029_v7, %v1029_v7  ;;  %1518 = vmatpush.bf16.msra.mxu2 %v2149_v61 }
 0x107   : > { %v777_v9 = vpack.c.bf16 %v770_v8, %v770_v8  ;;  %v778_v13 = vpack.c.bf16 %v771_v57, %v771_v57  ;;  %v842_v14 = vld [vmem:[#allocation2 + $0x37] sm:$0xff]  ;;  %v959_v19 = vld [vmem:[#allocation2 + $0x2e] sm:$0xff]  ;;  %1546 = vmatpush.bf16.msrb.mxu3 %v2157_v62 }
 0x108   : > { %v821_v16 = vld [vmem:[#allocation2 + $0x32] sm:$0xff]  ;;  %v849_v58 = vpack.c.bf16 %v842_v14, %v842_v14  ;;  %v820_v20 = vld [vmem:[#allocation2 + $0x2a] sm:$0xff]  ;;  %764 = vst.msk [vmem:[#allocation3 + $0x78] sm:$0xf] %vm757_vm4, %v756_v15  ;;  %v966_v22 = vpack.c.bf16 %v959_v19, %v959_v19 }
 0x109   : > { %v828_v17 = vpack.c.bf16 %v821_v16, %v821_v16  ;;  %v960_v18 = vld [vmem:[#allocation2 + $0x36] sm:$0xff]  ;;  %796 = vrot.lane.b32.xlu2 %v777_v9, %s2288_s29  ;;  %798 = vrot.lane.b32.xlu0 %v778_v13, %s2288_s29  ;;  %v827_v36 = vpack.c.bf16 %v820_v20, %v820_v20  ;;  %904 = vst.msk [vmem:[#allocation3 + $0x6c] sm:$0xf] %vm757_vm4, %v756_v15  ;;  %v2154_v14 = vld [vmem:[%s2887_s4 + $0xc8] sm:$0xff]  ;;  %v2145_v16 = vld [vmem:[%s2887_s4 + $0x80] sm:$0xff] }
 0x10a   : > { %v967_v21 = vpack.c.bf16 %v960_v18, %v960_v18  ;;  %869 = vrot.lane.b32.xlu1 %v849_v58, %s2288_s29  ;;  %973 = vst.msk [vmem:[#allocation3 + $0x5c] sm:$0xf] %vm757_vm4, %v966_v22  ;;  %v980_v38 = vld [vmem:[#allocation2 + $0x2f] sm:$0xff]  ;;  %1519 = vmatpush.bf16.msra.mxu2 %v2148_v0  ;;  %v2137_v20 = vld [vmem:[%s2887_s4 + $0x40] sm:$0xff] }
 0x10b   : > { %835 = vst.msk [vmem:[#allocation3 + $0x7c] sm:$0xf] %vm757_vm4, %v828_v17  ;;  %v987_v10 = vpack.c.bf16 %v980_v38, %v980_v38  ;;  %v2138_v19 = vld [vmem:[%s2887_s4 + $0x48] sm:$0xff] }
 0x10c   : > { %974 = vst.msk [vmem:[#allocation3 + $0x70] sm:$0xf] %vm757_vm4, %v967_v21 }
 0x10d   : > { %834 = vst.msk [vmem:[#allocation3 + $0x68] sm:$0xf] %vm757_vm4, %v827_v36 }
 0x10e   : > { %1043 = vst.msk [vmem:[#allocation3 + $0x60] sm:$0xf] %vm757_vm4, %v756_v15  ;;  %1520 = vmatpush.bf16.msra.mxu2 %v2147_v3  ;;  %v2139_v15 = vld [vmem:[%s2887_s4 + $0x50] sm:$0xff] }
 0x111   : > { %927 = vrot.lane.b32.xlu2 %v2522_v12, %s2288_s29  ;;  %929 = vrot.lane.b32.xlu0 %v2543_v34, %s2288_s29  ;;  %v2136_v12 = vld [vmem:[%s2887_s4 + $0x38] sm:$0xff]  ;;  %v979_v34 = vld [vmem:[#allocation2 + $0x27] sm:$0xff] }
 0x112   : > { %997 = vrot.lane.b32.xlu1 %v983_v24, %s2288_s29  ;;  %1459 = vmatpush.bf16.msrb.mxu0 %v2136_v12  ;;  %v986_v11 = vpack.c.bf16 %v979_v34, %v979_v34 }
 0x116   : > { %1460 = vmatpush.bf16.msrb.mxu0 %v2135_v32 }
 0x119   : > { %999 = vrot.lane.b32.xlu2 %v984_v28, %s2288_s29  ;;  %857 = vrot.lane.b32.xlu0 %v843_v29, %s2288_s29 }
 0x11a   : > { %859 = vrot.lane.b32.xlu1 %v983_v24, %s2288_s29  ;;  %1461 = vmatpush.bf16.msrb.mxu0 %v2134_v35  ;;  %v2161_v24 = vld [vmem:[%s2887_s4 + $0x100] sm:$0xff] }
 0x11e   : > { %1462 = vmatpush.bf16.msrb.mxu0 %v2133_v37 }
 0x121   : > { %931 = vrot.lane.b32.xlu2 %v2564_v56, %s2288_s29  ;;  %933 = vrot.lane.b32.xlu0 %v776_v1, %s2288_s29  ;;  %v2143_v56 = vld [vmem:[%s2887_s4 + $0x70] sm:$0xff]  ;;  %v2156_v1 = vld [vmem:[%s2887_s4 + $0xd8] sm:$0xff] }
 0x122   : > { %1001 = vrot.lane.b32.xlu1 %v985_v31, %s2288_s29  ;;  %1463 = vmatpush.bf16.msrb.mxu0 %v2132_v40 }
 0x123   : > { %1488 = vmatpush.bf16.msrb.mxu1 %v2143_v56  ;;  %1547 = vmatpush.bf16.msrb.mxu3 %v2156_v1  ;;  %v2118_v1 = vld [vmem:[#allocation3 + $0x20] sm:$0xf0] }
 0x126   : > { %1464 = vmatpush.bf16.msrb.mxu0 %v2131_v41 }
 0x127   : > { %1489 = vmatpush.bf16.msrb.mxu1 %v2142_v47  ;;  %1548 = vmatpush.bf16.msrb.mxu3 %v2155_v4 }
 0x129   : > { %1003 = vrot.lane.b32.xlu2 %v986_v11, %s2288_s29  ;;  %861 = vrot.lane.b32.xlu0 %v984_v28, %s2288_s29 }
 0x12a   : > { %863 = vrot.lane.b32.xlu1 %v985_v31, %s2288_s29  ;;  %1465 = vmatpush.bf16.msrb.mxu0 %v2130_v50 }
 0x12b   : > { %1490 = vmatpush.bf16.msrb.mxu1 %v2141_v63  ;;  %1549 = vmatpush.bf16.msrb.mxu3 %v2154_v14 }
 0x12e   : > { %1466 = vmatpush.bf16.msrb.mxu0 %v2129_v53 }
 0x12f   : > { %1491 = vmatpush.bf16.msrb.mxu1 %v2140_v2 }
 0x131   : > { %935 = vrot.lane.b32.xlu2 %v777_v9, %s2288_s29  ;;  %937 = vrot.lane.b32.xlu0 %v778_v13, %s2288_s29  ;;  %v2162_v9 = vld [vmem:[%s2887_s4 + $0x108] sm:$0xff] }
 0x132   : > { %1005 = vrot.lane.b32.xlu1 %v987_v10, %s2288_s29  ;;  %1575 = vmatpush.bf16.msra.mxu0 %v2164_v26  ;;  %v2146_v13 = vld [vmem:[%s2887_s4 + $0x88] sm:$0xff] }
 0x133   : > { %1521 = vmatpush.bf16.msra.mxu2 %v2146_v13  ;;  %1492 = vmatpush.bf16.msrb.mxu1 %v2139_v15  ;;  %v1031_v13 = vld [vmem:[#allocation2 + $0x40] sm:$0xff] }
 0x134   : > { %v1038_v14 = vpack.c.bf16 %v1031_v13, %v1031_v13 }
 0x136   : > { %1576 = vmatpush.bf16.msra.mxu0 %v2163_v43  ;;  %1045 = vst.msk [vmem:[#allocation3 + $0x88] sm:$0xf] %vm757_vm4, %v1038_v14 }
 0x137   : > { %1522 = vmatpush.bf16.msra.mxu2 %v2145_v16  ;;  %1493 = vmatpush.bf16.msrb.mxu1 %v2138_v19 }
 0x139   : > { %1007 = vrot.lane.b32.xlu2 %v849_v58, %s2288_s29  ;;  %865 = vrot.lane.b32.xlu0 %v986_v11, %s2288_s29  ;;  %v2153_v58 = vld [vmem:[%s2887_s4 + $0xc0] sm:$0xff] }
 0x13a   : > { %867 = vrot.lane.b32.xlu1 %v987_v10, %s2288_s29  ;;  %1577 = vmatpush.bf16.msra.mxu0 %v2162_v9  ;;  %v1631_v9 = vld [vmem:[%s2890_s7 + $0x18] sm:$0xff] }
 0x13b   : > { %1550 = vmatpush.bf16.msrb.mxu3 %v2153_v58  ;;  %1494 = vmatpush.bf16.msrb.mxu1 %v2137_v20 }
 0x13e   : > { %1578 = vmatpush.bf16.msra.mxu0 %v2161_v24 }
 0x141   : > { %1009 = vrot.lane.b32.xlu0 %v989_v39, %s2288_s29  ;;  %939 = vrot.lane.b32.xlu2 %v919_v45, %s2288_s29  ;;  %v961_v45 = vld [vmem:[#allocation2 + $0x3e] sm:$0xff] }
 0x142   : > { %v968_v50 = vpack.c.bf16 %v961_v45, %v961_v45  ;;  %1637 = vperm.xlu1 %2211, %v1628_v59  }
 0x144   : > { %975 = vst.msk [vmem:[#allocation3 + $0x84] sm:$0xf] %vm757_vm4, %v968_v50 }
 0x14a   : > { %1652 = vperm.xlu1 %2211, %v1631_v9   ;;  %v2804_v9 = vld [vmem:[%s2889_s6] ss:$0 sm:$0xff] }
 0x152   : > { %v787_v48 = vpop.permute.xlu0 %786 }
 0x153   : > { %808 = vst.msk [vmem:[#allocation3] sm:$0xf] %vm807_vm5, %v787_v48 }
 0x15a   : > { %v795_v49 = vpop.permute.xlu2 %794  ;;  %v1891_v7 = vld [vmem:[#allocation3] sm:$0xf] }
 0x15b   : > { %v789_v33 = vpop.permute.xlu0 %788  ;;  %812 = vst.msk [vmem:[#allocation3 + $0x50] sm:$0xf] %vm807_vm5, %v795_v49 }
 0x15c   : > { %809 = vst.msk [vmem:[#allocation3 + $0x14] sm:$0xf] %vm807_vm5, %v789_v33 }
 0x162   : > { %v1931_v32 = vld [vmem:[#allocation3 + $0x50] sm:$0xf] }
 0x163   : > { %v797_v5 = vpop.permute.xlu2 %796  ;;  %v791_v6 = vpop.permute.xlu1 %790  ;;  %v2116_v8 = vld [vmem:[#allocation3 + $0x10] sm:$0xf0] }
 0x164   : > { %813 = vst.msk [vmem:[#allocation3 + $0x64] sm:$0xf] %vm807_vm5, %v797_v5  ;;  %v1892_v57 = vor.u32 %v2116_v8, %v1891_v7 }
 0x165   : > { %810 = vst.msk [vmem:[#allocation3 + $0x28] sm:$0xf] %vm807_vm5, %v791_v6  ;;  %v1907_v6 = vld [vmem:[#allocation3 + $0x10] sm:$0xf] }
 0x166   : > { %1467 = vmatmul.bf16.vlgmr.msrb.gmra.mxu0 %v1892_v57  ;;  %v1908_v8 = vor.u32 %v2118_v1, %v1907_v6  ;;  %v1630_v57 = vld [vmem:[%s2890_s7 + $0x10] sm:$0xff] }
 0x167   : > { %1647 = vperm.xlu0 %2213, %v1630_v57  }
 0x16b   : > { %v928_v17 = vpop.permute.xlu2 %927  ;;  %v793_v18 = vpop.permute.xlu1 %792  ;;  %v2126_v29 = vld [vmem:[#allocation3 + $0x60] sm:$0xf0] }
 0x16c   : > { %948 = vst.msk [vmem:[#allocation3 + $0x8] sm:$0xf] %vm807_vm5, %v928_v17  ;;  %v1911_v22 = vld [vmem:[#allocation3 + $0x28] sm:$0xf]  ;;  %v1932_v34 = vor.u32 %v2126_v29, %v1931_v32  ;;  %v1633_v29 = vld [vmem:[%s2890_s7 + $0x28] sm:$0xff] }
 0x16d   : > { %811 = vst.msk [vmem:[#allocation3 + $0x3c] sm:$0xf] %vm807_vm5, %v793_v18  ;;  %1662 = vperm.xlu1 %2211, %v1633_v29  }
 0x173   : > { %v1000_v21 = vpop.permute.xlu2 %999  ;;  %v1899_v38 = vld [vmem:[#allocation3 + $0x8] sm:$0xf] }
 0x174   : > { %1019 = vst.msk [vmem:[#allocation3 + $0x20] sm:$0xf] %vm807_vm5, %v1000_v21  ;;  %v2121_v36 = vld [vmem:[#allocation3 + $0x38] sm:$0xf0] }
 0x175   : > { %v1912_v23 = vor.u32 %v2121_v36, %v1911_v22  ;;  %v2123_v22 = vld [vmem:[#allocation3 + $0x48] sm:$0xf0] }
 0x177   : > { %1472 = vmatmul.bf16.gmra.mxu0 %v1912_v23 }
 0x17b   : > { %v799_v25 = vpop.permute.xlu0 %798  ;;  %v932_v27 = vpop.permute.xlu2 %931  ;;  %v1901_v42 = vld [vmem:[#allocation3 + $0x1c] sm:$0xf0] }
 0x17c   : > { %814 = vst.msk [vmem:[#allocation3 + $0x78] sm:$0xf] %vm807_vm5, %v799_v25  ;;  %v870_v28 = vpop.permute.xlu1 %869  ;;  %v1927_v25 = vld [vmem:[#allocation3 + $0x38] sm:$0xf] }
 0x17d   : > { %950 = vst.msk [vmem:[#allocation3 + $0x30] sm:$0xf] %vm807_vm5, %v932_v27 }
 0x17e   : > { %884 = vst.msk [vmem:[#allocation3 + $0x7c] sm:$0xf] %vm807_vm5, %v870_v28  ;;  %v1928_v28 = vor.u32 %v2123_v22, %v1927_v25 }
 0x183   : > { %v1004_v30 = vpop.permute.xlu2 %1003  ;;  %v930_v31 = vpop.permute.xlu0 %929 }
 0x184   : > { %1021 = vst.msk [vmem:[#allocation3 + $0x48] sm:$0xf] %vm807_vm5, %v1004_v30  ;;  %v998_v12 = vpop.permute.xlu1 %997  ;;  %v1919_v62 = vld [vmem:[#allocation3 + $0x30] sm:$0xf]  ;;  %v1629_v30 = vld [vmem:[%s2890_s7 + $0x8] sm:$0xff] }
 0x185   : > { %949 = vst.msk [vmem:[#allocation3 + $0x1c] sm:$0xf] %vm807_vm5, %v930_v31  ;;  %v2738_v39 = vld [vmem:[#allocation3 + $0x78] sm:$0xff]  ;;  %1642 = vperm.xlu2 %2212, %v1629_v30  }
 0x186   : > { %1018 = vst.msk [vmem:[#allocation3 + $0xc] sm:$0xf] %vm807_vm5, %v998_v12  ;;  %v1190_v46 = vunpack.c.l.b16 %v2738_v39 }
 0x187   : > { %1477 = vmatmul.bf16.gmra.mxu0 %v1932_v34 }
 0x188   : > { %v1210_v55 = vpack.c.b16 %v1190_v46, %v1190_v46 }
 0x18b   : > { %v936_v11 = vpop.permute.xlu2 %935  ;;  %v858_v35 = vpop.permute.xlu0 %857  ;;  %v1921_v33 = vld [vmem:[#allocation3 + $0x44] sm:$0xf0] }
 0x18c   : > { %952 = vst.msk [vmem:[#allocation3 + $0x58] sm:$0xf] %vm807_vm5, %v936_v11  ;;  %v860_v37 = vpop.permute.xlu1 %859  ;;  %v2117_v10 = vld [vmem:[#allocation3 + $0x18] sm:$0xf0] }
 0x18d   : > { %878 = vst.msk [vmem:[#allocation3 + $0x4] sm:$0xf] %vm807_vm5, %v858_v35  ;;  %v1900_v40 = vor.u32 %v2117_v10, %v1899_v38  ;;  %v2115_v41 = vld [vmem:[#allocation3 + $0xc] sm:$0xf]  ;;  %v1191_v35 = vunpack.c.h.b16 %v2738_v39  ;;  %v2128_v38 = vld [vmem:[#allocation3 + $0x70] sm:$0xf0] }
 0x18e   : > { %879 = vst.msk [vmem:[#allocation3 + $0x18] sm:$0xf] %vm807_vm5, %v860_v37  ;;  %v1904_v44 = vor.u32 %v2115_v41, %v1901_v42  ;;  %v1947_v37 = vld [vmem:[#allocation3 + $0x60] sm:$0xf]  ;;  %v1632_v10 = vld [vmem:[%s2890_s7 + $0x20] sm:$0xff] }
 0x18f   : > { %1523 = vmatmul.bf16.vlgmr.msra.gmra.mxu2 %v1900_v40  ;;  %v1948_v40 = vor.u32 %v2128_v38, %v1947_v37  ;;  %1657 = vperm.xlu2 %2212, %v1632_v10   ;;  %v1211_v41 = vpack.c.b16 %v1191_v35, %v1191_v35  ;;  %v1066_v42 = vld [vmem:[#allocation3 + $0x88] sm:$0xf] }
 0x190   : > { %1551 = vmatmul.bf16.vlgmr.msrb.gmra.mxu3 %v1904_v44  ;;  %v1634_v44 = vld [vmem:[%s2890_s7 + $0x30] sm:$0xff]  ;;  %v1194_v45 = vunpack.c.l.b16 %v1066_v42  ;;  %v1699_v42 = vld [vmem:[%s2891_s8 + $0x18] sm:$0xff] }
 0x192   : > { %v1214_v39 = vpack.c.b16 %v1194_v45, %v1194_v45 }
 0x193   : > { %v1008_v51 = vpop.permute.xlu2 %1007  ;;  %v934_v52 = vpop.permute.xlu0 %933  ;;  %v1939_v16 = vld [vmem:[#allocation3 + $0x58] sm:$0xf] }
 0x194   : > { %1023 = vst.msk [vmem:[#allocation3 + $0x70] sm:$0xf] %vm807_vm5, %v1008_v51  ;;  %v1002_v53 = vpop.permute.xlu1 %1001  ;;  %v2114_v54 = vld [vmem:[#allocation3 + $0x4] sm:$0xf] }
 0x195   : > { %951 = vst.msk [vmem:[#allocation3 + $0x44] sm:$0xf] %vm807_vm5, %v934_v52  ;;  %v1893_v26 = vld [vmem:[#allocation3 + $0x14] sm:$0xf0] }
 0x196   : > { %1020 = vst.msk [vmem:[#allocation3 + $0x34] sm:$0xf] %vm807_vm5, %v1002_v53  ;;  %v1896_v56 = vor.u32 %v2114_v54, %v1893_v26 }
 0x197   : > { %1482 = vmatmul.bf16.gmra.mxu0 %v1210_v55  ;;  %1667 = vperm.xlu2 %2212, %v1634_v44   ;;  %v1703_v55 = vld [vmem:[%s2891_s8 + $0x38] sm:$0xff] }
 0x198   : > { %1495 = vmatmul.bf16.vlgmr.msrb.gmra.mxu1 %v1896_v56 }
 0x199   : > { %1716 = vmatpush.msra.mxu1 %v1703_v55 }
 0x19b   : > { %v862_v47 = vpop.permute.xlu0 %861  ;;  %v940_v48 = vpop.permute.xlu2 %939  ;;  %v1941_v20 = vld [vmem:[#allocation3 + $0x6c] sm:$0xf0] }
 0x19c   : > { %880 = vst.msk [vmem:[#allocation3 + $0x2c] sm:$0xf] %vm807_vm5, %v862_v47  ;;  %v864_v61 = vpop.permute.xlu1 %863  ;;  %v2122_v43 = vld [vmem:[#allocation3 + $0x40] sm:$0xf0]  ;;  %v1702_v47 = vld [vmem:[%s2891_s8 + $0x30] sm:$0xff] }
 0x19d   : > { %881 = vst.msk [vmem:[#allocation3 + $0x40] sm:$0xf] %vm807_vm5, %v864_v61  ;;  %v1920_v63 = vor.u32 %v2122_v43, %v1919_v62  ;;  %v2120_v49 = vld [vmem:[#allocation3 + $0x34] sm:$0xf]  ;;  %1717 = vmatpush.msra.mxu1 %v1702_v47 }
 0x19e   : > { %v1924_v0 = vor.u32 %v2120_v49, %v1921_v33  ;;  %954 = vst.msk [vmem:[#allocation3 + $0x80] sm:$0xf] %vm807_vm5, %v940_v48  ;;  %v1701_v33 = vld [vmem:[%s2891_s8 + $0x28] sm:$0xff] }
 0x19f   : > { %1528 = vmatmul.bf16.gmra.mxu2 %v1920_v63  ;;  %1718 = vmatpush.msra.mxu1 %v1701_v33 }
 0x1a0   : > { %1556 = vmatmul.bf16.gmra.mxu3 %v1924_v0 }
 0x1a3   : > { %v938_v2 = vpop.permute.xlu0 %937  ;;  %v2119_v3 = vld [vmem:[#allocation3 + $0x2c] sm:$0xf] }
 0x1a4   : > { %953 = vst.msk [vmem:[#allocation3 + $0x6c] sm:$0xf] %vm807_vm5, %v938_v2  ;;  %v1006_v4 = vpop.permute.xlu1 %1005  ;;  %v1913_v5 = vld [vmem:[#allocation3 + $0x3c] sm:$0xf0] }
 0x1a5   : > { %1022 = vst.msk [vmem:[#allocation3 + $0x5c] sm:$0xf] %vm807_vm5, %v1006_v4  ;;  %v1916_v7 = vor.u32 %v2119_v3, %v1913_v5  ;;  %v2798_v4 = vld [vmem:[%s2888_s5] ss:$0 sm:$0xff] }
 0x1a7   : > { %2093 = vmatmul.msk.bf16.vlgmr.msra.gmra.mxu0 %vm733_vm3, %v1908_v8 }
 0x1a8   : > { %1500 = vmatmul.bf16.gmra.mxu1 %v1916_v7 }
 0x1ab   : > { %v866_v15 = vpop.permute.xlu0 %865  ;;  %v2127_v58 = vld [vmem:[#allocation3 + $0x68] sm:$0xf0] }
 0x1ac   : > { %882 = vst.msk [vmem:[#allocation3 + $0x54] sm:$0xf] %vm807_vm5, %v866_v15  ;;  %v868_v17 = vpop.permute.xlu1 %867  ;;  %v1940_v18 = vor.u32 %v2127_v58, %v1939_v16  ;;  %v2125_v19 = vld [vmem:[#allocation3 + $0x5c] sm:$0xf] }
 0x1ad   : > { %883 = vst.msk [vmem:[#allocation3 + $0x68] sm:$0xf] %vm807_vm5, %v868_v17  ;;  %v1944_v21 = vor.u32 %v2125_v19, %v1941_v20 }
 0x1af   : > { %1533 = vmatmul.bf16.gmra.mxu2 %v1940_v18 }
 0x1b0   : > { %1561 = vmatmul.bf16.gmra.mxu3 %v1944_v21 }
 0x1b3   : > { %v1010_v36 = vpop.permute.xlu0 %1009  ;;  %v2124_v23 = vld [vmem:[#allocation3 + $0x54] sm:$0xf] }
 0x1b4   : > { %1024 = vst.msk [vmem:[#allocation3 + $0x84] sm:$0xf] %vm807_vm5, %v1010_v36  ;;  %v1933_v24 = vld [vmem:[#allocation3 + $0x64] sm:$0xf0]  ;;  %v1638_v36 = vpop.permute.xlu1 %1637 }
 0x1b5   : > { %v1936_v27 = vor.u32 %v2124_v23, %v1933_v24  ;;  %v1700_v23 = vld [vmem:[%s2891_s8 + $0x20] sm:$0xff] }
 0x1b6   : > { %1719 = vmatpush.msra.mxu1 %v1700_v23 }
 0x1b7   : > { %2094 = vmatmul.msk.bf16.gmra.mxu0 %vm733_vm3, %v1928_v28 }
 0x1b8   : > { %1505 = vmatmul.bf16.gmra.mxu1 %v1936_v27 }
 0x1b9   : > { %1720 = vmatpush.msra.mxu1 %v1699_v42 }
 0x1bb   : > { %v1065_v31 = vld [vmem:[#allocation3 + $0x80] sm:$0xff] }
 0x1bc   : > { %v1192_v12 = vunpack.c.l.b16 %v1065_v31  ;;  %v1193_v32 = vunpack.c.h.b16 %v1065_v31 }
 0x1be   : > { %v1212_v34 = vpack.c.b16 %v1192_v12, %v1192_v12  ;;  %v1213_v11 = vpack.c.b16 %v1193_v32, %v1193_v32 }
 0x1c0   : > { %1538 = vmatmul.bf16.gmra.mxu2 %v1212_v34  ;;  %1566 = vmatmul.bf16.gmra.mxu3 %v1213_v11 }
 0x1c7   : > { %2095 = vmatmul.msk.bf16.gmra.mxu0 %vm733_vm3, %v1948_v40 }
 0x1c8   : > { %1510 = vmatmul.bf16.gmra.mxu1 %v1211_v41 }
 0x1d7   : > { %2096 = vmatmul.msk.bf16.gmra.mxu0 %vm733_vm3, %v1214_v39 }
 0x1d9   : > { %v1648_v45 = vpop.permute.xlu0 %1647 }
 0x1df   : > { %v1643_v27 = vpop.permute.xlu2 %1642 }
 0x1e3   : > { %v1468_v46 = vpop.f32.mrf.mxu0 }
 0x1eb   : > { %v1470_v50 = vpop.f32.mrf.mxu0 }
 0x1f4   : > { %v1473_v51 = vpop.f32.mrf.mxu0 }
 0x1fc   : > { %v1475_v52 = vpop.f32.mrf.mxu0 }
 0x204   : > { %v2780_v53 = vpop.f32.mrf.mxu0 }
 0x20c   : > { %v2782_v54 = vpop.f32.mrf.mxu0 }
 0x212   : > { %v1524_v26 = vpop.f32.mrf.mxu2 }
 0x213   : > { %v1552_v56 = vpop.f32.mrf.mxu3 }
 0x214   : > { %v2787_v59 = vpop.f32.mrf.mxu0 }
 0x215   : > { %v1496_v60 = vpop.f32.mrf.mxu1 }
 0x216   : > { %v1497_v61 = vadd.f32 %v1496_v60, %v1468_v46 }
 0x218   : > { %v1525_v49 = vadd.f32 %v1524_v26, %v1497_v61 }
 0x21a   : > { %v1526_v48 = vpop.f32.mrf.mxu2  ;;  %v1553_v3 = vadd.f32 %v1552_v56, %v1525_v49 }
 0x21b   : > { %v1554_v62 = vpop.f32.mrf.mxu3 }
 0x21c   : > { %v1485_v43 = vpop.f32.mrf.mxu0 }
 0x21d   : > { %v1498_v63 = vpop.f32.mrf.mxu1 }
 0x21e   : > { %v1499_v1 = vadd.f32 %v1498_v63, %v1470_v50 }
 0x220   : > { %v1527_v8 = vadd.f32 %v1526_v48, %v1499_v1  ;;  %v1653_v1 = vpop.permute.xlu1 %1652 }
 0x222   : > { %v1529_v0 = vpop.f32.mrf.mxu2  ;;  %v1555_v58 = vadd.f32 %v1554_v62, %v1527_v8  ;;  %v1697_v8 = vld [vmem:[%s2891_s8 + $0x8] sm:$0xff] }
 0x223   : > { %v1557_v2 = vpop.f32.mrf.mxu3 }
 0x224   : > { %v1580_v5 = vpop.f32.mrf.mxu0 }
 0x225   : > { %v1501_v6 = vpop.f32.mrf.mxu1  ;;  %v1581_v7 = vadd.f32 %v1580_v5, %v1553_v3 }
 0x226   : > { %v1502_v14 = vadd.f32 %v1501_v6, %v1473_v51 }
 0x227   : > { %v1603_v57 = vmul.f32 %v2798_v4, %v1581_v7  ;;  %v1698_v7 = vld [vmem:[%s2891_s8 + $0x10] sm:$0xff] }
 0x228   : > { %v1530_v20 = vadd.f32 %v1529_v0, %v1502_v14  ;;  %1721 = vmatpush.msra.mxu1 %v1698_v7 }
 0x229   : > { %v1614_v16 = vadd.f32 %v2804_v9, %v1603_v57 }
 0x22a   : > { %v1531_v13 = vpop.f32.mrf.mxu2  ;;  %v1558_v12 = vadd.f32 %v1557_v2, %v1530_v20  ;;  %1722 = vmatpush.msra.mxu1 %v1697_v8 }
 0x22b   : > { %v1559_v15 = vpop.f32.mrf.mxu3  ;;  %v1621_v21 = vmax.f32 %v1614_v16, 0.0 }
 0x22c   : > { %v1582_v17 = vpop.f32.mrf.mxu0 }
 0x22d   : > { %v1503_v18 = vpop.f32.mrf.mxu1  ;;  %v1583_v19 = vadd.f32 %v1582_v17, %v1555_v58  ;;  %v1670_v29 = vmul.f32 %v1638_v36, %v1621_v21  ;;  %v1658_v21 = vpop.permute.xlu2 %1657 }
 0x22e   : > { %v1504_v28 = vadd.f32 %v1503_v18, %v1475_v52 }
 0x22f   : > { %v1604_v22 = vmul.f32 %v2798_v4, %v1583_v19  ;;  %v1677_v38 = vsel %vm733_vm3, %v1670_v29, 0.0 }
 0x230   : > { %v1532_v37 = vadd.f32 %v1531_v13, %v1504_v28 }
 0x231   : > { %v1615_v24 = vadd.f32 %v2804_v9, %v1604_v22 }
 0x232   : > { %v1534_v25 = vpop.f32.mrf.mxu2  ;;  %v1560_v52 = vadd.f32 %v1559_v15, %v1532_v37  ;;  %v1696_v15 = vld [vmem:[%s2891_s8] sm:$0xff] }
 0x233   : > { %v1562_v30 = vpop.f32.mrf.mxu3  ;;  %v1622_v31 = vmax.f32 %v1615_v24, 0.0  ;;  %1723 = vmatpush.msra.mxu1 %v1696_v15 }
 0x234   : > { %v1585_v32 = vpop.f32.mrf.mxu0 }
 0x235   : > { %v1671_v34 = vmul.f32 %v1643_v27, %v1622_v31  ;;  %v1506_v11 = vpop.f32.mrf.mxu1  ;;  %v1586_v35 = vadd.f32 %v1585_v32, %v1558_v12  ;;  %v1663_v12 = vpop.permute.xlu1 %1662 }
 0x236   : > { %v1507_v39 = vadd.f32 %v1506_v11, %v2780_v53 }
 0x237   : > { %v1678_v10 = vsel %vm733_vm3, %v1671_v34, 0.0  ;;  %v1605_v40 = vmul.f32 %v2798_v4, %v1586_v35 }
 0x238   : > { %v1679_v41 = vadd.f32 %v1678_v10, %v1677_v38  ;;  %v1535_v47 = vadd.f32 %v1534_v25, %v1507_v39 }
 0x239   : > { %v1616_v44 = vadd.f32 %v2804_v9, %v1605_v40 }
 0x23a   : > { %v1536_v46 = vpop.f32.mrf.mxu2  ;;  %v1563_v53 = vadd.f32 %v1562_v30, %v1535_v47 }
 0x23b   : > { %v1564_v50 = vpop.f32.mrf.mxu3  ;;  %v1623_v51 = vmax.f32 %v1616_v44, 0.0 }
 0x23c   : > { %v1587_v55 = vpop.f32.mrf.mxu0 }
 0x23d   : > { %v1672_v26 = vmul.f32 %v1648_v45, %v1623_v51  ;;  %v1508_v56 = vpop.f32.mrf.mxu1  ;;  %v1588_v60 = vadd.f32 %v1587_v55, %v1560_v52 }
 0x23e   : > { %v1509_v63 = vadd.f32 %v1508_v56, %v2782_v54 }
 0x23f   : > { %v1680_v48 = vsel %vm733_vm3, %v1672_v26, 0.0  ;;  %v1606_v61 = vmul.f32 %v2798_v4, %v1588_v60 }
 0x240   : > { %v1681_v62 = vadd.f32 %v1680_v48, %v1679_v41  ;;  %v1537_v57 = vadd.f32 %v1536_v46, %v1509_v63  ;;  %v1668_v41 = vpop.permute.xlu2 %1667 }
 0x241   : > { %v1617_v43 = vadd.f32 %v2804_v9, %v1606_v61 }
 0x242   : > { %v1565_v18 = vadd.f32 %v1564_v50, %v1537_v57 }
 0x243   : > { %v1624_v49 = vmax.f32 %v1617_v43, 0.0  ;;  %v1539_v33 = vpop.f32.mrf.mxu2  ;;  %v1567_v0 = vpop.f32.mrf.mxu3 }
 0x244   : > { %v1590_v2 = vpop.f32.mrf.mxu0 }
 0x245   : > { %v1673_v3 = vmul.f32 %v1653_v1, %v1624_v49  ;;  %v1511_v5 = vpop.f32.mrf.mxu1  ;;  %v1591_v6 = vadd.f32 %v1590_v2, %v1563_v53 }
 0x246   : > { %v1512_v58 = vadd.f32 %v1511_v5, %v2787_v59 }
 0x247   : > { %v1682_v54 = vsel %vm733_vm3, %v1673_v3, 0.0  ;;  %v1607_v13 = vmul.f32 %v2798_v4, %v1591_v6 }
 0x248   : > { %v1683_v14 = vadd.f32 %v1682_v54, %v1681_v62  ;;  %v1540_v27 = vadd.f32 %v1539_v33, %v1512_v58 }
 0x249   : > { %v1618_v16 = vadd.f32 %v2804_v9, %v1607_v13 }
 0x24a   : > { %v1568_v31 = vadd.f32 %v1567_v0, %v1540_v27 }
 0x24b   : > { %v1625_v17 = vmax.f32 %v1618_v16, 0.0  ;;  %v1541_v19 = vpop.f32.mrf.mxu2  ;;  %v1569_v20 = vpop.f32.mrf.mxu3 }
 0x24c   : > { %v1592_v22 = vpop.f32.mrf.mxu0 }
 0x24d   : > { %v1674_v36 = vmul.f32 %v1658_v21, %v1625_v17  ;;  %v1513_v23 = vpop.f32.mrf.mxu1  ;;  %v1593_v24 = vadd.f32 %v1592_v22, %v1565_v18 }
 0x24f   : > { %v1684_v25 = vsel %vm733_vm3, %v1674_v36, 0.0  ;;  %v1608_v28 = vmul.f32 %v2798_v4, %v1593_v24 }
 0x250   : > { %v1685_v29 = vadd.f32 %v1684_v25, %v1683_v14 }
 0x251   : > { %v1619_v30 = vadd.f32 %v2804_v9, %v1608_v28 }
 0x253   : > { %v1626_v59 = vmax.f32 %v1619_v30, 0.0 }
 0x254   : > { %v1595_v32 = vpop.f32.mrf.mxu0 }
 0x255   : > { %v1675_v34 = vmul.f32 %v1663_v12, %v1626_v59  ;;  %v1596_v11 = vadd.f32 %v1595_v32, %v1568_v31 }
 0x257   : > { %v1686_v35 = vsel %vm733_vm3, %v1675_v34, 0.0  ;;  %v1609_v37 = vmul.f32 %v2798_v4, %v1596_v11  ;;  %v1704_v4 = vld [vmem:[%s2892_s9] sm:$0x1] }
 0x258   : > { %v1687_v38 = vadd.f32 %v1686_v35, %v1685_v29 }
 0x259   : > { %v1620_v10 = vadd.f32 %v2804_v9, %v1609_v37 }
 0x25b   : > { %v1627_v40 = vmax.f32 %v1620_v10, 0.0 }
 0x25c   : > { %v1597_v42 = vpop.f32.mrf.mxu0 }
 0x25d   : > { %v1676_v44 = vmul.f32 %v1668_v41, %v1627_v40 }
 0x25f   : > { %v1688_v45 = vsel %vm733_vm3, %v1676_v44, 0.0 }
 0x260   : > { %v1689_v39 = vadd.f32 %v1688_v45, %v1687_v38 }
 0x262   : > { %v1690_v46 = vrot.slane %v1689_v39, 4 }
 0x264   : > { %v1691_v50 = vadd.f32 %v1690_v46, %v1689_v39 }
 0x266   : > { %v1692_v51 = vrot.slane %v1691_v50, 2 }
 0x268   : > { %v1693_v52 = vadd.f32 %v1692_v51, %v1691_v50 }
 0x26a   : > { %v1694_v55 = vrot.slane %v1693_v52, 1 }
 0x26c   : > { %v1695_v26 = vadd.f32 %v1694_v55, %v1693_v52 }
 0x26e   : > { %2097 = vmatmul.msk.f32.vlgmr.msra.gmra.mxu1 %vm733_vm3, %v1695_v26 }
 0x2eb   : > { %v1725_v9 = vpop.f32.mrf.mxu1 }
 0x2ec   : > { %v1726_v56 = vadd.f32 %v1725_v9, %v1704_v4 }
 0x2ee   : > { %v1729_v60 = vsel %vm1728_vm6, %v1726_v56, -inf }
 0x2ef   : > { %1730 = vmax.xlane.f32.xlu0 %v1729_v60 }
 0x362   : > { %v1731_v47 = vpop.xlane.xlu0 %1730 }
 0x363   : > { %v1732_v48 = vsub.f32 %v1726_v56, %v1731_v47 }
 0x365   : > { %v1733_v61 = vmul.f32 1.442695, %v1732_v48 }
 0x367   : > { %2218 = vpow2.f32 %v1733_v61 }
 0x36d   : > { %v2219_v62 = vpop.eup %2218 }
 0x36e   : > { %v1735_v43 = vsel %vm1728_vm6, %v2219_v62, 0.0 }
 0x36f   : > { %1736 = vadd.xlane.f32.xlu1 %v1735_v43 }
 0x3e2   : > { %v1737_v63 = vpop.xlane.xlu1 %1736 }
 0x3e3   : > { %2220 = vrcp.f32 %v1737_v63 }
 0x3e9   : > { %v2221_v49 = vpop.eup %2220 }
 0x3ea   : > { %v1739_v53 = vmul.f32 %v2221_v49, %v1737_v63 }
 0x3ec   : > { %v1740_v33 = vsub.f32 2.0, %v1739_v53 }
 0x3ee   : > { %v1741_v0 = vmul.f32 %v2221_v49, %v1740_v33 }
 0x3f0   : > { %v1742_v1 = vmul.f32 %v2219_v62, %v1741_v0 }
 0x3f2   : > { %1743 = vst.msk [vmem:[%s351_s20] sm:$0x1] %vm1728_vm6, %v1742_v1 }
 0x3f3   : > { %2249 = shalt.err (!%p2246_p3)
}
 0x3f4   : > { %2168 = dma.vmem_to_hbm [thread:$0]  (%p2383_p5), %s1756_s21, 16, %s1758_s25, %s1745_s26  }
 0x3f5 PF: > { %p2174_p4 = scmp.ge.s32.totalorder %s2284_s16, 2  ;;  %s1769_s30 = sand.u32 1, %s2272_s13  }
 0x3f6   : > { %s1770_s20 = scalar_lea.sflag [#allocation5], %s1769_s30 }
 0x3f7   : > { %p2171_p7 = pnand %p2174_p4, %p2387_p6 }
 0x3f9   : > { %p2172_p8 = pneg %p2171_p7 }
 0x3fb   : > { %2267 = dma.done.wait (%p2172_p8), %s1770_s20, 16  }
 0x3fc   : > { %2269 = vsyncadd (%p2172_p8), %s1770_s20, 4294967280  ;;  %p20_p9 = scmp.ge.s32.totalorder %s2370_s19, 4   ;;  %s2896_s13 = smov %s2276_s14 }
 0x3fd   : > { %s2897_s14 = smov %s2280_s15  ;;  %s2898_s15 = smov %s2381_s22 }
 0x3fe   : > { %s2899_s16 = smov %s2370_s19  ;;  %22 = sbr.rel (!%p20_p9) target bundleno = 3 (0x3), region = 95 }
 0x403   :  { %1775 = vsyncpa [#allocation5], 1 }
 0x404   :  { %1777 = vsyncpa [#allocation5 + $0x1], 1 }

</bundles_post_ra>
